<compile_context>
chip_gen: v5e
topology: v5e:2x2
jax: 0.10.0
libtpu: 0.0.40
codegen_flags: <defaults>
</compile_context>

<pallas_src>
import math
import numpy as np

import jax
import jax.numpy as jnp
from jax.experimental import pallas as pl
from jax.experimental.pallas import tpu as pltpu


# ----------------------------------------------------------------------------
# Fused forward kernel: one image per grid step.
# Activation layout at every stage: 2-D matrix A[h, c*W + w].
# ----------------------------------------------------------------------------
def lenet5_kernel(x_ref,                      # (1, 32, 32)   input image (IC=1)
                  g1_ref, b1_ref,             # (5, 32, 168), (1, 168)   conv1
                  ph1_ref, pw1_ref,           # (14, 28), (168, 84)      pool1
                  h2_ref, b2_ref,             # (5, 84, 160), (1, 160)   conv2
                  ph2_ref, pw2_ref,           # (5, 10), (160, 80)       pool2
                  h3_ref, b3_ref,             # (5, 80, 120), (1, 120)   conv3
                  w4_ref, b4_ref,             # (120, 84), (1, 84)       fc1
                  w5_ref, b5_ref,             # (84, 128), (1, 128)      fc2 (padded)
                  o_ref):                     # (1, 1, 128)
    f32 = jnp.float32
    x = x_ref[0]                                                  # (32, 32)

    # conv1 + tanh: 5 row-tap matmuls; output lanes = (oc, ow) = 6*28 = 168.
    acc1 = jnp.zeros((28, 168), f32)
    for ki in range(5):
        acc1 += jnp.dot(x[ki:ki + 28, :], g1_ref[ki],
                        preferred_element_type=f32)
    a1 = jnp.tanh(acc1 + b1_ref[...])                             # (28, 168)

    # pool1 (2x2 avg) as two small matmuls.
    p1 = jnp.dot(ph1_ref[...],
                 jnp.dot(a1, pw1_ref[...], preferred_element_type=f32),
                 preferred_element_type=f32)                      # (14, 84)

    # conv2 + tanh: lanes = 16*10 = 160.
    acc2 = jnp.zeros((10, 160), f32)
    for ki in range(5):
        acc2 += jnp.dot(p1[ki:ki + 10, :], h2_ref[ki],
                        preferred_element_type=f32)
    a2 = jnp.tanh(acc2 + b2_ref[...])                             # (10, 160)

    # pool2.
    p2 = jnp.dot(ph2_ref[...],
                 jnp.dot(a2, pw2_ref[...], preferred_element_type=f32),
                 preferred_element_type=f32)                      # (5, 80)

    # conv3 + tanh: spatially 1x1 -> (1, 120) channel vector (== flatten(1)).
    acc3 = jnp.zeros((1, 120), f32)
    for ki in range(5):
        acc3 += jnp.dot(p2[ki:ki + 1, :], h3_ref[ki],
                        preferred_element_type=f32)
    a3 = jnp.tanh(acc3 + b3_ref[...])                             # (1, 120)

    # fc1 + tanh.
    h = jnp.tanh(jnp.dot(a3, w4_ref[...], preferred_element_type=f32)
                 + b4_ref[...])                                   # (1, 84)

    # fc2 + softmax over a 128-lane padded row: pad columns have zero weights
    # and a -1e9 bias, so their probabilities are exactly 0.
    z = jnp.dot(h, w5_ref[...], preferred_element_type=f32) + b5_ref[...]
    z = z - jnp.max(z, axis=-1, keepdims=True)
    e = jnp.exp(z)
    s = jnp.sum(e, axis=-1, keepdims=True)
    inv = pl.reciprocal(s, approx=True)
    inv = inv * (2.0 - s * inv)            # one Newton step -> ~f32 accuracy
    o_ref[0] = e * inv                                            # (1, 128)


# ----------------------------------------------------------------------------
# One-time parameter packing (hoisted out of the per-step forward).
# ----------------------------------------------------------------------------
def _pack_conv_rowtaps(w, w_in):
    """Torch conv weight (OC, IC, KH, KW) -> (KH, IC*w_in, OC*ow) matrices.

    Matrix ki maps an input row with lanes (ic, w) to that row-tap's
    contribution to the conv output row with lanes (oc, ow):
        M_ki[ic*w_in + (ow+kj), oc*ow_n + ow] = w[oc, ic, ki, kj]."""
    w = np.asarray(w, np.float32)
    oc_n, ic_n, kh, kw = w.shape
    ow_n = w_in - kw + 1
    out = np.zeros((kh, ic_n * w_in, oc_n * ow_n), np.float32)
    for ki in range(kh):
        for kj in range(kw):
            blk = w[:, :, ki, kj].T                       # (IC, OC)
            for ow in range(ow_n):
                rows = np.arange(ic_n) * w_in + ow + kj
                cols = np.arange(oc_n) * ow_n + ow
                out[ki, rows[:, None], cols[None, :]] += blk
    return out


def _pool_mats(h, w, c):
    """2x2/stride-2 avg-pool as (left, right) matmul matrices for A[h, c*w]."""
    ph = np.zeros((h // 2, h), np.float32)
    ph[np.arange(h // 2), 2 * np.arange(h // 2)] = 0.5
    ph[np.arange(h // 2), 2 * np.arange(h // 2) + 1] = 0.5
    pw = np.zeros((c * w, c * (w // 2)), np.float32)
    for ci in range(c):
        for p in range(w // 2):
            pw[ci * w + 2 * p, ci * (w // 2) + p] = 0.5
            pw[ci * w + 2 * p + 1, ci * (w // 2) + p] = 0.5
    return ph, pw


def prepare_params(params):
    g1 = _pack_conv_rowtaps(params["c1_w"], 32)           # (5, 32, 168)
    h2 = _pack_conv_rowtaps(params["c2_w"], 14)           # (5, 84, 160)
    h3 = _pack_conv_rowtaps(params["c3_w"], 5)            # (5, 80, 120)
    ph1, pw1 = _pool_mats(28, 28, 6)
    ph2, pw2 = _pool_mats(10, 10, 16)
    b1 = np.repeat(np.asarray(params["c1_b"], np.float32), 28)[None]   # (1,168)
    b2 = np.repeat(np.asarray(params["c2_b"], np.float32), 10)[None]   # (1,160)
    b3 = np.asarray(params["c3_b"], np.float32)[None]                  # (1,120)
    w4 = np.asarray(params["l1_w"], np.float32).T                      # (120,84)
    b4 = np.asarray(params["l1_b"], np.float32)[None]                  # (1,84)
    w5 = np.zeros((84, 128), np.float32)
    w5[:, :10] = np.asarray(params["l2_w"], np.float32).T
    b5 = np.full((1, 128), -1e9, np.float32)
    b5[0, :10] = np.asarray(params["l2_b"], np.float32)
    packed = dict(g1=g1, b1=b1, ph1=ph1, pw1=pw1, h2=h2, b2=b2, ph2=ph2,
                  pw2=pw2, h3=h3, b3=b3, w4=w4, b4=b4, w5=w5, b5=b5)
    return {k: jnp.asarray(v) for k, v in packed.items()}


# ----------------------------------------------------------------------------
# Forward wrapper: one pallas_call, grid over the batch.
# ----------------------------------------------------------------------------
def lenet5_forward(packed, x_nchw):
    assert x_nchw.shape[1:] == (1, 32, 32)
    n = x_nchw.shape[0]
    x2d = x_nchw[:, 0, :, :]                               # (N, 32, 32); IC == 1

    def full(shape):
        return pl.BlockSpec(shape, lambda b, _s=len(shape): (0,) * _s)

    out_padded = pl.pallas_call(
        lenet5_kernel,
        out_shape=jax.ShapeDtypeStruct((n, 1, 128), jnp.float32),
        grid_spec=pltpu.PrefetchScalarGridSpec(
            num_scalar_prefetch=0,
            grid=(n,),
            in_specs=[
                pl.BlockSpec((1, 32, 32), lambda b: (b, 0, 0)),    # image b
                full((5, 32, 168)), full((1, 168)),                # conv1
                full((14, 28)), full((168, 84)),                   # pool1
                full((5, 84, 160)), full((1, 160)),                # conv2
                full((5, 10)), full((160, 80)),                    # pool2
                full((5, 80, 120)), full((1, 120)),                # conv3
                full((120, 84)), full((1, 84)),                    # fc1
                full((84, 128)), full((1, 128)),                   # fc2
            ],
            out_specs=pl.BlockSpec((1, 1, 128), lambda b: (b, 0, 0)),
        ),
        compiler_params=pltpu.CompilerParams(
            dimension_semantics=("parallel",),
            vmem_limit_bytes=32 * 1024 * 1024),
    )(x2d,
      packed["g1"], packed["b1"], packed["ph1"], packed["pw1"],
      packed["h2"], packed["b2"], packed["ph2"], packed["pw2"],
      packed["h3"], packed["b3"], packed["w4"], packed["b4"],
      packed["w5"], packed["b5"])
    return out_padded[:, 0, :10]


# ----------------------------------------------------------------------------
# Deterministic PyTorch-default-style init + pure-JAX reference (for checking).
# ----------------------------------------------------------------------------
def init_params(key):
    def uinit(k, shape, fan_in):
        bound = 1.0 / math.sqrt(fan_in)
        return jax.random.uniform(k, shape, jnp.float32, -bound, bound)

    ks = jax.random.split(key, 10)
    return {
        "c1_w": uinit(ks[0], (6, 1, 5, 5), 1 * 5 * 5),
        "c1_b": uinit(ks[1], (6,), 1 * 5 * 5),
        "c2_w": uinit(ks[2], (16, 6, 5, 5), 6 * 5 * 5),
        "c2_b": uinit(ks[3], (16,), 6 * 5 * 5),
        "c3_w": uinit(ks[4], (120, 16, 5, 5), 16 * 5 * 5),
        "c3_b": uinit(ks[5], (120,), 16 * 5 * 5),
        "l1_w": uinit(ks[6], (84, 120), 120),    # PyTorch Linear: (out, in)
        "l1_b": uinit(ks[7], (84,), 120),
        "l2_w": uinit(ks[8], (10, 84), 84),
        "l2_b": uinit(ks[9], (10,), 84),
    }


def reference_forward(params, x):
    hp = jax.lax.Precision.HIGHEST
    dn = ("NCHW", "OIHW", "NCHW")
    y = x
    for wk, bk, pool in (("c1_w", "c1_b", True),
                         ("c2_w", "c2_b", True),
                         ("c3_w", "c3_b", False)):
        y = jax.lax.conv_general_dilated(y, params[wk], (1, 1), "VALID",
                                         dimension_numbers=dn, precision=hp)
        y = jnp.tanh(y + params[bk][None, :, None, None])
        if pool:
            y = jax.lax.reduce_window(y, 0.0, jax.lax.add,
                                      (1, 1, 2, 2), (1, 1, 2, 2), "VALID") * 0.25
    y = y.reshape(y.shape[0], -1)
    y = jnp.tanh(jnp.dot(y, params["l1_w"].T, precision=hp) + params["l1_b"])
    z = jnp.dot(y, params["l2_w"].T, precision=hp) + params["l2_b"]
    return jax.nn.softmax(z, axis=-1)


if __name__ == "__main__":
    key = jax.random.PRNGKey(0)
    pkey, xkey = jax.random.split(key)
    params = init_params(pkey)
    packed = prepare_params(params)            # one-time weight repacking

    x = jax.random.normal(xkey, (2, 1, 32, 32), dtype=jnp.float32)

    out = jax.jit(lenet5_forward)(packed, x)
    out = jax.block_until_ready(out)

    assert out.shape == (2, 10)
    # softmax rows sum to 1
    assert bool(jnp.all(jnp.abs(jnp.sum(out, axis=1) - 1.0) < 1e-3))
    # matches a pure-JAX f32 reference of the PyTorch module
    ref = jax.jit(reference_forward)(params, x)
    assert bool(jnp.max(jnp.abs(out - ref)) < 5e-3)

    print("KERNEL_OK")
</pallas_src>

<mosaic_0001>
module attributes {stable_mosaic.version = 11 : i64} {
  func.func @lenet5_kernel(%arg0: i32, %arg1: memref<1x32x32xf32, #tpu.memory_space<vmem>>, %arg2: memref<5x32x168xf32, #tpu.memory_space<vmem>>, %arg3: memref<1x168xf32, #tpu.memory_space<vmem>>, %arg4: memref<14x28xf32, #tpu.memory_space<vmem>>, %arg5: memref<168x84xf32, #tpu.memory_space<vmem>>, %arg6: memref<5x84x160xf32, #tpu.memory_space<vmem>>, %arg7: memref<1x160xf32, #tpu.memory_space<vmem>>, %arg8: memref<5x10xf32, #tpu.memory_space<vmem>>, %arg9: memref<160x80xf32, #tpu.memory_space<vmem>>, %arg10: memref<5x80x120xf32, #tpu.memory_space<vmem>>, %arg11: memref<1x120xf32, #tpu.memory_space<vmem>>, %arg12: memref<120x84xf32, #tpu.memory_space<vmem>>, %arg13: memref<1x84xf32, #tpu.memory_space<vmem>>, %arg14: memref<84x128xf32, #tpu.memory_space<vmem>>, %arg15: memref<1x128xf32, #tpu.memory_space<vmem>>, %arg16: memref<1x1x128xf32, #tpu.memory_space<vmem>>) attributes {dimension_semantics = [#tpu.dimension_semantics<parallel>], iteration_bounds = array<i64: 2>, scalar_prefetch = 0 : i64, scratch_operands = 0 : i64, tpu.core_type = #tpu.core_type<tc>, window_params = [{transform_indices = @transform_0, window_bounds = array<i64: 1, 32, 32>}, {pipeline_mode = #tpu.pipeline_mode<synchronous>, transform_indices = @transform_1, window_bounds = array<i64: 5, 32, 168>}, {pipeline_mode = #tpu.pipeline_mode<synchronous>, transform_indices = @transform_2, window_bounds = array<i64: 1, 168>}, {pipeline_mode = #tpu.pipeline_mode<synchronous>, transform_indices = @transform_3, window_bounds = array<i64: 14, 28>}, {pipeline_mode = #tpu.pipeline_mode<synchronous>, transform_indices = @transform_4, window_bounds = array<i64: 168, 84>}, {pipeline_mode = #tpu.pipeline_mode<synchronous>, transform_indices = @transform_5, window_bounds = array<i64: 5, 84, 160>}, {pipeline_mode = #tpu.pipeline_mode<synchronous>, transform_indices = @transform_6, window_bounds = array<i64: 1, 160>}, {pipeline_mode = #tpu.pipeline_mode<synchronous>, transform_indices = @transform_7, window_bounds = array<i64: 5, 10>}, {pipeline_mode = #tpu.pipeline_mode<synchronous>, transform_indices = @transform_8, window_bounds = array<i64: 160, 80>}, {pipeline_mode = #tpu.pipeline_mode<synchronous>, transform_indices = @transform_9, window_bounds = array<i64: 5, 80, 120>}, {pipeline_mode = #tpu.pipeline_mode<synchronous>, transform_indices = @transform_10, window_bounds = array<i64: 1, 120>}, {pipeline_mode = #tpu.pipeline_mode<synchronous>, transform_indices = @transform_11, window_bounds = array<i64: 120, 84>}, {pipeline_mode = #tpu.pipeline_mode<synchronous>, transform_indices = @transform_12, window_bounds = array<i64: 1, 84>}, {pipeline_mode = #tpu.pipeline_mode<synchronous>, transform_indices = @transform_13, window_bounds = array<i64: 84, 128>}, {pipeline_mode = #tpu.pipeline_mode<synchronous>, transform_indices = @transform_14, window_bounds = array<i64: 1, 128>}, {transform_indices = @transform_15, window_bounds = array<i64: 1, 1, 128>}]} {
    %c0 = arith.constant 0 : index
    %c0_0 = arith.constant 0 : index
    %c0_1 = arith.constant 0 : index
    %0 = vector.load %arg1[%c0, %c0_0, %c0_1] : memref<1x32x32xf32, #tpu.memory_space<vmem>>, vector<1x32x32xf32>
    %1 = vector.shape_cast %0 : vector<1x32x32xf32> to vector<32x32xf32>
    %cst = arith.constant 0.000000e+00 : f32
    %2 = vector.broadcast %cst : f32 to vector<28x168xf32>
    %3 = vector.extract_strided_slice %1 {offsets = [0, 0], sizes = [28, 32], strides = [1, 1]} : vector<32x32xf32> to vector<28x32xf32>
    %c0_2 = arith.constant 0 : index
    %c0_3 = arith.constant 0 : index
    %c0_4 = arith.constant 0 : index
    %4 = vector.load %arg2[%c0_2, %c0_3, %c0_4] : memref<5x32x168xf32, #tpu.memory_space<vmem>>, vector<1x32x168xf32>
    %5 = vector.shape_cast %4 : vector<1x32x168xf32> to vector<32x168xf32>
    %cst_5 = arith.constant dense<0.000000e+00> : vector<28x168xf32>
    %6 = tpu.matmul %3, %5, %cst_5 {dimension_numbers = #tpu.dot_dimension_numbers<[1], [0], [0], [1], [0, 0, 1, 1], [], []>} : vector<28x32xf32>, vector<32x168xf32>, vector<28x168xf32> -> vector<28x168xf32>
    %7 = arith.addf %2, %6 : vector<28x168xf32>
    %8 = vector.extract_strided_slice %1 {offsets = [1, 0], sizes = [28, 32], strides = [1, 1]} : vector<32x32xf32> to vector<28x32xf32>
    %c1 = arith.constant 1 : index
    %c0_6 = arith.constant 0 : index
    %c0_7 = arith.constant 0 : index
    %9 = vector.load %arg2[%c1, %c0_6, %c0_7] : memref<5x32x168xf32, #tpu.memory_space<vmem>>, vector<1x32x168xf32>
    %10 = vector.shape_cast %9 : vector<1x32x168xf32> to vector<32x168xf32>
    %cst_8 = arith.constant dense<0.000000e+00> : vector<28x168xf32>
    %11 = tpu.matmul %8, %10, %cst_8 {dimension_numbers = #tpu.dot_dimension_numbers<[1], [0], [0], [1], [0, 0, 1, 1], [], []>} : vector<28x32xf32>, vector<32x168xf32>, vector<28x168xf32> -> vector<28x168xf32>
    %12 = arith.addf %7, %11 : vector<28x168xf32>
    %13 = vector.extract_strided_slice %1 {offsets = [2, 0], sizes = [28, 32], strides = [1, 1]} : vector<32x32xf32> to vector<28x32xf32>
    %c2 = arith.constant 2 : index
    %c0_9 = arith.constant 0 : index
    %c0_10 = arith.constant 0 : index
    %14 = vector.load %arg2[%c2, %c0_9, %c0_10] : memref<5x32x168xf32, #tpu.memory_space<vmem>>, vector<1x32x168xf32>
    %15 = vector.shape_cast %14 : vector<1x32x168xf32> to vector<32x168xf32>
    %cst_11 = arith.constant dense<0.000000e+00> : vector<28x168xf32>
    %16 = tpu.matmul %13, %15, %cst_11 {dimension_numbers = #tpu.dot_dimension_numbers<[1], [0], [0], [1], [0, 0, 1, 1], [], []>} : vector<28x32xf32>, vector<32x168xf32>, vector<28x168xf32> -> vector<28x168xf32>
    %17 = arith.addf %12, %16 : vector<28x168xf32>
    %18 = vector.extract_strided_slice %1 {offsets = [3, 0], sizes = [28, 32], strides = [1, 1]} : vector<32x32xf32> to vector<28x32xf32>
    %c3 = arith.constant 3 : index
    %c0_12 = arith.constant 0 : index
    %c0_13 = arith.constant 0 : index
    %19 = vector.load %arg2[%c3, %c0_12, %c0_13] : memref<5x32x168xf32, #tpu.memory_space<vmem>>, vector<1x32x168xf32>
    %20 = vector.shape_cast %19 : vector<1x32x168xf32> to vector<32x168xf32>
    %cst_14 = arith.constant dense<0.000000e+00> : vector<28x168xf32>
    %21 = tpu.matmul %18, %20, %cst_14 {dimension_numbers = #tpu.dot_dimension_numbers<[1], [0], [0], [1], [0, 0, 1, 1], [], []>} : vector<28x32xf32>, vector<32x168xf32>, vector<28x168xf32> -> vector<28x168xf32>
    %22 = arith.addf %17, %21 : vector<28x168xf32>
    %23 = vector.extract_strided_slice %1 {offsets = [4, 0], sizes = [28, 32], strides = [1, 1]} : vector<32x32xf32> to vector<28x32xf32>
    %c4 = arith.constant 4 : index
    %c0_15 = arith.constant 0 : index
    %c0_16 = arith.constant 0 : index
    %24 = vector.load %arg2[%c4, %c0_15, %c0_16] : memref<5x32x168xf32, #tpu.memory_space<vmem>>, vector<1x32x168xf32>
    %25 = vector.shape_cast %24 : vector<1x32x168xf32> to vector<32x168xf32>
    %cst_17 = arith.constant dense<0.000000e+00> : vector<28x168xf32>
    %26 = tpu.matmul %23, %25, %cst_17 {dimension_numbers = #tpu.dot_dimension_numbers<[1], [0], [0], [1], [0, 0, 1, 1], [], []>} : vector<28x32xf32>, vector<32x168xf32>, vector<28x168xf32> -> vector<28x168xf32>
    %27 = arith.addf %22, %26 : vector<28x168xf32>
    %c0_18 = arith.constant 0 : index
    %c0_19 = arith.constant 0 : index
    %28 = vector.load %arg3[%c0_18, %c0_19] : memref<1x168xf32, #tpu.memory_space<vmem>>, vector<1x168xf32>
    %29 = vector.broadcast %28 : vector<1x168xf32> to vector<28x168xf32>
    %30 = arith.addf %27, %29 : vector<28x168xf32>
    %31 = math.tanh %30 : vector<28x168xf32>
    %c0_20 = arith.constant 0 : index
    %c0_21 = arith.constant 0 : index
    %32 = vector.load %arg4[%c0_20, %c0_21] : memref<14x28xf32, #tpu.memory_space<vmem>>, vector<14x28xf32>
    %c0_22 = arith.constant 0 : index
    %c0_23 = arith.constant 0 : index
    %33 = vector.load %arg5[%c0_22, %c0_23] : memref<168x84xf32, #tpu.memory_space<vmem>>, vector<168x84xf32>
    %cst_24 = arith.constant dense<0.000000e+00> : vector<28x84xf32>
    %34 = tpu.matmul %31, %33, %cst_24 {dimension_numbers = #tpu.dot_dimension_numbers<[1], [0], [0], [1], [0, 0, 1, 1], [], []>} : vector<28x168xf32>, vector<168x84xf32>, vector<28x84xf32> -> vector<28x84xf32>
    %cst_25 = arith.constant dense<0.000000e+00> : vector<14x84xf32>
    %35 = tpu.matmul %32, %34, %cst_25 {dimension_numbers = #tpu.dot_dimension_numbers<[1], [0], [0], [1], [0, 0, 1, 1], [], []>} : vector<14x28xf32>, vector<28x84xf32>, vector<14x84xf32> -> vector<14x84xf32>
    %cst_26 = arith.constant 0.000000e+00 : f32
    %36 = vector.broadcast %cst_26 : f32 to vector<10x160xf32>
    %37 = vector.extract_strided_slice %35 {offsets = [0, 0], sizes = [10, 84], strides = [1, 1]} : vector<14x84xf32> to vector<10x84xf32>
    %c0_27 = arith.constant 0 : index
    %c0_28 = arith.constant 0 : index
    %c0_29 = arith.constant 0 : index
    %38 = vector.load %arg6[%c0_27, %c0_28, %c0_29] : memref<5x84x160xf32, #tpu.memory_space<vmem>>, vector<1x84x160xf32>
    %39 = vector.shape_cast %38 : vector<1x84x160xf32> to vector<84x160xf32>
    %cst_30 = arith.constant dense<0.000000e+00> : vector<10x160xf32>
    %40 = tpu.matmul %37, %39, %cst_30 {dimension_numbers = #tpu.dot_dimension_numbers<[1], [0], [0], [1], [0, 0, 1, 1], [], []>} : vector<10x84xf32>, vector<84x160xf32>, vector<10x160xf32> -> vector<10x160xf32>
    %41 = arith.addf %36, %40 : vector<10x160xf32>
    %42 = vector.extract_strided_slice %35 {offsets = [1, 0], sizes = [10, 84], strides = [1, 1]} : vector<14x84xf32> to vector<10x84xf32>
    %c1_31 = arith.constant 1 : index
    %c0_32 = arith.constant 0 : index
    %c0_33 = arith.constant 0 : index
    %43 = vector.load %arg6[%c1_31, %c0_32, %c0_33] : memref<5x84x160xf32, #tpu.memory_space<vmem>>, vector<1x84x160xf32>
    %44 = vector.shape_cast %43 : vector<1x84x160xf32> to vector<84x160xf32>
    %cst_34 = arith.constant dense<0.000000e+00> : vector<10x160xf32>
    %45 = tpu.matmul %42, %44, %cst_34 {dimension_numbers = #tpu.dot_dimension_numbers<[1], [0], [0], [1], [0, 0, 1, 1], [], []>} : vector<10x84xf32>, vector<84x160xf32>, vector<10x160xf32> -> vector<10x160xf32>
    %46 = arith.addf %41, %45 : vector<10x160xf32>
    %47 = vector.extract_strided_slice %35 {offsets = [2, 0], sizes = [10, 84], strides = [1, 1]} : vector<14x84xf32> to vector<10x84xf32>
    %c2_35 = arith.constant 2 : index
    %c0_36 = arith.constant 0 : index
    %c0_37 = arith.constant 0 : index
    %48 = vector.load %arg6[%c2_35, %c0_36, %c0_37] : memref<5x84x160xf32, #tpu.memory_space<vmem>>, vector<1x84x160xf32>
    %49 = vector.shape_cast %48 : vector<1x84x160xf32> to vector<84x160xf32>
    %cst_38 = arith.constant dense<0.000000e+00> : vector<10x160xf32>
    %50 = tpu.matmul %47, %49, %cst_38 {dimension_numbers = #tpu.dot_dimension_numbers<[1], [0], [0], [1], [0, 0, 1, 1], [], []>} : vector<10x84xf32>, vector<84x160xf32>, vector<10x160xf32> -> vector<10x160xf32>
    %51 = arith.addf %46, %50 : vector<10x160xf32>
    %52 = vector.extract_strided_slice %35 {offsets = [3, 0], sizes = [10, 84], strides = [1, 1]} : vector<14x84xf32> to vector<10x84xf32>
    %c3_39 = arith.constant 3 : index
    %c0_40 = arith.constant 0 : index
    %c0_41 = arith.constant 0 : index
    %53 = vector.load %arg6[%c3_39, %c0_40, %c0_41] : memref<5x84x160xf32, #tpu.memory_space<vmem>>, vector<1x84x160xf32>
    %54 = vector.shape_cast %53 : vector<1x84x160xf32> to vector<84x160xf32>
    %cst_42 = arith.constant dense<0.000000e+00> : vector<10x160xf32>
    %55 = tpu.matmul %52, %54, %cst_42 {dimension_numbers = #tpu.dot_dimension_numbers<[1], [0], [0], [1], [0, 0, 1, 1], [], []>} : vector<10x84xf32>, vector<84x160xf32>, vector<10x160xf32> -> vector<10x160xf32>
    %56 = arith.addf %51, %55 : vector<10x160xf32>
    %57 = vector.extract_strided_slice %35 {offsets = [4, 0], sizes = [10, 84], strides = [1, 1]} : vector<14x84xf32> to vector<10x84xf32>
    %c4_43 = arith.constant 4 : index
    %c0_44 = arith.constant 0 : index
    %c0_45 = arith.constant 0 : index
    %58 = vector.load %arg6[%c4_43, %c0_44, %c0_45] : memref<5x84x160xf32, #tpu.memory_space<vmem>>, vector<1x84x160xf32>
    %59 = vector.shape_cast %58 : vector<1x84x160xf32> to vector<84x160xf32>
    %cst_46 = arith.constant dense<0.000000e+00> : vector<10x160xf32>
    %60 = tpu.matmul %57, %59, %cst_46 {dimension_numbers = #tpu.dot_dimension_numbers<[1], [0], [0], [1], [0, 0, 1, 1], [], []>} : vector<10x84xf32>, vector<84x160xf32>, vector<10x160xf32> -> vector<10x160xf32>
    %61 = arith.addf %56, %60 : vector<10x160xf32>
    %c0_47 = arith.constant 0 : index
    %c0_48 = arith.constant 0 : index
    %62 = vector.load %arg7[%c0_47, %c0_48] : memref<1x160xf32, #tpu.memory_space<vmem>>, vector<1x160xf32>
    %63 = vector.broadcast %62 : vector<1x160xf32> to vector<10x160xf32>
    %64 = arith.addf %61, %63 : vector<10x160xf32>
    %65 = math.tanh %64 : vector<10x160xf32>
    %c0_49 = arith.constant 0 : index
    %c0_50 = arith.constant 0 : index
    %66 = vector.load %arg8[%c0_49, %c0_50] : memref<5x10xf32, #tpu.memory_space<vmem>>, vector<5x10xf32>
    %c0_51 = arith.constant 0 : index
    %c0_52 = arith.constant 0 : index
    %67 = vector.load %arg9[%c0_51, %c0_52] : memref<160x80xf32, #tpu.memory_space<vmem>>, vector<160x80xf32>
    %cst_53 = arith.constant dense<0.000000e+00> : vector<10x80xf32>
    %68 = tpu.matmul %65, %67, %cst_53 {dimension_numbers = #tpu.dot_dimension_numbers<[1], [0], [0], [1], [0, 0, 1, 1], [], []>} : vector<10x160xf32>, vector<160x80xf32>, vector<10x80xf32> -> vector<10x80xf32>
    %cst_54 = arith.constant dense<0.000000e+00> : vector<5x80xf32>
    %69 = tpu.matmul %66, %68, %cst_54 {dimension_numbers = #tpu.dot_dimension_numbers<[1], [0], [0], [1], [0, 0, 1, 1], [], []>} : vector<5x10xf32>, vector<10x80xf32>, vector<5x80xf32> -> vector<5x80xf32>
    %cst_55 = arith.constant 0.000000e+00 : f32
    %70 = vector.broadcast %cst_55 : f32 to vector<1x120xf32>
    %71 = vector.extract_strided_slice %69 {offsets = [0, 0], sizes = [1, 80], strides = [1, 1]} : vector<5x80xf32> to vector<1x80xf32>
    %c0_56 = arith.constant 0 : index
    %c0_57 = arith.constant 0 : index
    %c0_58 = arith.constant 0 : index
    %72 = vector.load %arg10[%c0_56, %c0_57, %c0_58] : memref<5x80x120xf32, #tpu.memory_space<vmem>>, vector<1x80x120xf32>
    %73 = vector.shape_cast %72 : vector<1x80x120xf32> to vector<80x120xf32>
    %cst_59 = arith.constant dense<0.000000e+00> : vector<1x120xf32>
    %74 = tpu.matmul %71, %73, %cst_59 {dimension_numbers = #tpu.dot_dimension_numbers<[1], [0], [0], [1], [0, 0, 1, 1], [], []>} : vector<1x80xf32>, vector<80x120xf32>, vector<1x120xf32> -> vector<1x120xf32>
    %75 = arith.addf %70, %74 : vector<1x120xf32>
    %76 = vector.extract_strided_slice %69 {offsets = [1, 0], sizes = [1, 80], strides = [1, 1]} : vector<5x80xf32> to vector<1x80xf32>
    %c1_60 = arith.constant 1 : index
    %c0_61 = arith.constant 0 : index
    %c0_62 = arith.constant 0 : index
    %77 = vector.load %arg10[%c1_60, %c0_61, %c0_62] : memref<5x80x120xf32, #tpu.memory_space<vmem>>, vector<1x80x120xf32>
    %78 = vector.shape_cast %77 : vector<1x80x120xf32> to vector<80x120xf32>
    %cst_63 = arith.constant dense<0.000000e+00> : vector<1x120xf32>
    %79 = tpu.matmul %76, %78, %cst_63 {dimension_numbers = #tpu.dot_dimension_numbers<[1], [0], [0], [1], [0, 0, 1, 1], [], []>} : vector<1x80xf32>, vector<80x120xf32>, vector<1x120xf32> -> vector<1x120xf32>
    %80 = arith.addf %75, %79 : vector<1x120xf32>
    %81 = vector.extract_strided_slice %69 {offsets = [2, 0], sizes = [1, 80], strides = [1, 1]} : vector<5x80xf32> to vector<1x80xf32>
    %c2_64 = arith.constant 2 : index
    %c0_65 = arith.constant 0 : index
    %c0_66 = arith.constant 0 : index
    %82 = vector.load %arg10[%c2_64, %c0_65, %c0_66] : memref<5x80x120xf32, #tpu.memory_space<vmem>>, vector<1x80x120xf32>
    %83 = vector.shape_cast %82 : vector<1x80x120xf32> to vector<80x120xf32>
    %cst_67 = arith.constant dense<0.000000e+00> : vector<1x120xf32>
    %84 = tpu.matmul %81, %83, %cst_67 {dimension_numbers = #tpu.dot_dimension_numbers<[1], [0], [0], [1], [0, 0, 1, 1], [], []>} : vector<1x80xf32>, vector<80x120xf32>, vector<1x120xf32> -> vector<1x120xf32>
    %85 = arith.addf %80, %84 : vector<1x120xf32>
    %86 = vector.extract_strided_slice %69 {offsets = [3, 0], sizes = [1, 80], strides = [1, 1]} : vector<5x80xf32> to vector<1x80xf32>
    %c3_68 = arith.constant 3 : index
    %c0_69 = arith.constant 0 : index
    %c0_70 = arith.constant 0 : index
    %87 = vector.load %arg10[%c3_68, %c0_69, %c0_70] : memref<5x80x120xf32, #tpu.memory_space<vmem>>, vector<1x80x120xf32>
    %88 = vector.shape_cast %87 : vector<1x80x120xf32> to vector<80x120xf32>
    %cst_71 = arith.constant dense<0.000000e+00> : vector<1x120xf32>
    %89 = tpu.matmul %86, %88, %cst_71 {dimension_numbers = #tpu.dot_dimension_numbers<[1], [0], [0], [1], [0, 0, 1, 1], [], []>} : vector<1x80xf32>, vector<80x120xf32>, vector<1x120xf32> -> vector<1x120xf32>
    %90 = arith.addf %85, %89 : vector<1x120xf32>
    %91 = vector.extract_strided_slice %69 {offsets = [4, 0], sizes = [1, 80], strides = [1, 1]} : vector<5x80xf32> to vector<1x80xf32>
    %c4_72 = arith.constant 4 : index
    %c0_73 = arith.constant 0 : index
    %c0_74 = arith.constant 0 : index
    %92 = vector.load %arg10[%c4_72, %c0_73, %c0_74] : memref<5x80x120xf32, #tpu.memory_space<vmem>>, vector<1x80x120xf32>
    %93 = vector.shape_cast %92 : vector<1x80x120xf32> to vector<80x120xf32>
    %cst_75 = arith.constant dense<0.000000e+00> : vector<1x120xf32>
    %94 = tpu.matmul %91, %93, %cst_75 {dimension_numbers = #tpu.dot_dimension_numbers<[1], [0], [0], [1], [0, 0, 1, 1], [], []>} : vector<1x80xf32>, vector<80x120xf32>, vector<1x120xf32> -> vector<1x120xf32>
    %95 = arith.addf %90, %94 : vector<1x120xf32>
    %c0_76 = arith.constant 0 : index
    %c0_77 = arith.constant 0 : index
    %96 = vector.load %arg11[%c0_76, %c0_77] : memref<1x120xf32, #tpu.memory_space<vmem>>, vector<1x120xf32>
    %97 = arith.addf %95, %96 : vector<1x120xf32>
    %98 = math.tanh %97 : vector<1x120xf32>
    %c0_78 = arith.constant 0 : index
    %c0_79 = arith.constant 0 : index
    %99 = vector.load %arg12[%c0_78, %c0_79] : memref<120x84xf32, #tpu.memory_space<vmem>>, vector<120x84xf32>
    %cst_80 = arith.constant dense<0.000000e+00> : vector<1x84xf32>
    %100 = tpu.matmul %98, %99, %cst_80 {dimension_numbers = #tpu.dot_dimension_numbers<[1], [0], [0], [1], [0, 0, 1, 1], [], []>} : vector<1x120xf32>, vector<120x84xf32>, vector<1x84xf32> -> vector<1x84xf32>
    %c0_81 = arith.constant 0 : index
    %c0_82 = arith.constant 0 : index
    %101 = vector.load %arg13[%c0_81, %c0_82] : memref<1x84xf32, #tpu.memory_space<vmem>>, vector<1x84xf32>
    %102 = arith.addf %100, %101 : vector<1x84xf32>
    %103 = math.tanh %102 : vector<1x84xf32>
    %c0_83 = arith.constant 0 : index
    %c0_84 = arith.constant 0 : index
    %104 = vector.load %arg14[%c0_83, %c0_84] : memref<84x128xf32, #tpu.memory_space<vmem>>, vector<84x128xf32>
    %cst_85 = arith.constant dense<0.000000e+00> : vector<1x128xf32>
    %105 = tpu.matmul %103, %104, %cst_85 {dimension_numbers = #tpu.dot_dimension_numbers<[1], [0], [0], [1], [0, 0, 1, 1], [], []>} : vector<1x84xf32>, vector<84x128xf32>, vector<1x128xf32> -> vector<1x128xf32>
    %c0_86 = arith.constant 0 : index
    %c0_87 = arith.constant 0 : index
    %106 = vector.load %arg15[%c0_86, %c0_87] : memref<1x128xf32, #tpu.memory_space<vmem>>, vector<1x128xf32>
    %107 = arith.addf %105, %106 : vector<1x128xf32>
    %cst_88 = arith.constant dense<0xFF800000> : vector<1xf32>
    %108 = vector.multi_reduction <maximumf>, %107, %cst_88 [1] : vector<1x128xf32> to vector<1xf32>
    %109 = vector.shape_cast %108 : vector<1xf32> to vector<1x1xf32>
    %110 = vector.broadcast %109 : vector<1x1xf32> to vector<1x128xf32>
    %111 = arith.subf %107, %110 : vector<1x128xf32>
    %112 = math.exp %111 : vector<1x128xf32>
    %cst_89 = arith.constant dense<0.000000e+00> : vector<1xf32>
    %113 = vector.multi_reduction <add>, %112, %cst_89 [1] : vector<1x128xf32> to vector<1xf32>
    %114 = vector.shape_cast %113 : vector<1xf32> to vector<1x1xf32>
    %115 = tpu.reciprocal %114 {approx = true} : vector<1x1xf32> -> vector<1x1xf32>
    %116 = arith.mulf %114, %115 : vector<1x1xf32>
    %cst_90 = arith.constant 2.000000e+00 : f32
    %117 = vector.broadcast %cst_90 : f32 to vector<1x1xf32>
    %118 = arith.subf %117, %116 : vector<1x1xf32>
    %119 = arith.mulf %115, %118 : vector<1x1xf32>
    %120 = vector.broadcast %119 : vector<1x1xf32> to vector<1x128xf32>
    %121 = arith.mulf %112, %120 : vector<1x128xf32>
    %c0_91 = arith.constant 0 : index
    %c0_92 = arith.constant 0 : index
    %c0_93 = arith.constant 0 : index
    %122 = vector.load %arg16[%c0_91, %c0_92, %c0_93] : memref<1x1x128xf32, #tpu.memory_space<vmem>>, vector<1x1x128xf32>
    %123 = vector.shape_cast %122 : vector<1x1x128xf32> to vector<1x128xf32>
    %124 = vector.shape_cast %121 : vector<1x128xf32> to vector<1x1x128xf32>
    tpu.vector_store %arg16[%c0_91, %c0_92, %c0_93], %124 {strides = array<i32>} : memref<1x1x128xf32, #tpu.memory_space<vmem>>, vector<1x1x128xf32>,
    return
  }
  func.func @transform_0(%arg0: i32) -> (i32, i32, i32) {
    %c0_i32 = arith.constant 0 : i32
    %c0_i32_0 = arith.constant 0 : i32
    %c0_i32_1 = arith.constant 0 : i32
    return %arg0, %c0_i32, %c0_i32_0 : i32, i32, i32
  }
  func.func @transform_1(%arg0: i32) -> (i32, i32, i32) {
    %c0_i32 = arith.constant 0 : i32
    %c0_i32_0 = arith.constant 0 : i32
    %c0_i32_1 = arith.constant 0 : i32
    %c0_i32_2 = arith.constant 0 : i32
    return %c0_i32, %c0_i32_0, %c0_i32_1 : i32, i32, i32
  }
  func.func @transform_2(%arg0: i32) -> (i32, i32) {
    %c0_i32 = arith.constant 0 : i32
    %c0_i32_0 = arith.constant 0 : i32
    %c0_i32_1 = arith.constant 0 : i32
    return %c0_i32, %c0_i32_0 : i32, i32
  }
  func.func @transform_3(%arg0: i32) -> (i32, i32) {
    %c0_i32 = arith.constant 0 : i32
    %c0_i32_0 = arith.constant 0 : i32
    %c0_i32_1 = arith.constant 0 : i32
    return %c0_i32, %c0_i32_0 : i32, i32
  }
  func.func @transform_4(%arg0: i32) -> (i32, i32) {
    %c0_i32 = arith.constant 0 : i32
    %c0_i32_0 = arith.constant 0 : i32
    %c0_i32_1 = arith.constant 0 : i32
    return %c0_i32, %c0_i32_0 : i32, i32
  }
  func.func @transform_5(%arg0: i32) -> (i32, i32, i32) {
    %c0_i32 = arith.constant 0 : i32
    %c0_i32_0 = arith.constant 0 : i32
    %c0_i32_1 = arith.constant 0 : i32
    %c0_i32_2 = arith.constant 0 : i32
    return %c0_i32, %c0_i32_0, %c0_i32_1 : i32, i32, i32
  }
  func.func @transform_6(%arg0: i32) -> (i32, i32) {
    %c0_i32 = arith.constant 0 : i32
    %c0_i32_0 = arith.constant 0 : i32
    %c0_i32_1 = arith.constant 0 : i32
    return %c0_i32, %c0_i32_0 : i32, i32
  }
  func.func @transform_7(%arg0: i32) -> (i32, i32) {
    %c0_i32 = arith.constant 0 : i32
    %c0_i32_0 = arith.constant 0 : i32
    %c0_i32_1 = arith.constant 0 : i32
    return %c0_i32, %c0_i32_0 : i32, i32
  }
  func.func @transform_8(%arg0: i32) -> (i32, i32) {
    %c0_i32 = arith.constant 0 : i32
    %c0_i32_0 = arith.constant 0 : i32
    %c0_i32_1 = arith.constant 0 : i32
    return %c0_i32, %c0_i32_0 : i32, i32
  }
  func.func @transform_9(%arg0: i32) -> (i32, i32, i32) {
    %c0_i32 = arith.constant 0 : i32
    %c0_i32_0 = arith.constant 0 : i32
    %c0_i32_1 = arith.constant 0 : i32
    %c0_i32_2 = arith.constant 0 : i32
    return %c0_i32, %c0_i32_0, %c0_i32_1 : i32, i32, i32
  }
  func.func @transform_10(%arg0: i32) -> (i32, i32) {
    %c0_i32 = arith.constant 0 : i32
    %c0_i32_0 = arith.constant 0 : i32
    %c0_i32_1 = arith.constant 0 : i32
    return %c0_i32, %c0_i32_0 : i32, i32
  }
  func.func @transform_11(%arg0: i32) -> (i32, i32) {
    %c0_i32 = arith.constant 0 : i32
    %c0_i32_0 = arith.constant 0 : i32
    %c0_i32_1 = arith.constant 0 : i32
    return %c0_i32, %c0_i32_0 : i32, i32
  }
  func.func @transform_12(%arg0: i32) -> (i32, i32) {
    %c0_i32 = arith.constant 0 : i32
    %c0_i32_0 = arith.constant 0 : i32
    %c0_i32_1 = arith.constant 0 : i32
    return %c0_i32, %c0_i32_0 : i32, i32
  }
  func.func @transform_13(%arg0: i32) -> (i32, i32) {
    %c0_i32 = arith.constant 0 : i32
    %c0_i32_0 = arith.constant 0 : i32
    %c0_i32_1 = arith.constant 0 : i32
    return %c0_i32, %c0_i32_0 : i32, i32
  }
  func.func @transform_14(%arg0: i32) -> (i32, i32) {
    %c0_i32 = arith.constant 0 : i32
    %c0_i32_0 = arith.constant 0 : i32
    %c0_i32_1 = arith.constant 0 : i32
    return %c0_i32, %c0_i32_0 : i32, i32
  }
  func.func @transform_15(%arg0: i32) -> (i32, i32, i32) {
    %c0_i32 = arith.constant 0 : i32
    %c0_i32_0 = arith.constant 0 : i32
    %c0_i32_1 = arith.constant 0 : i32
    return %arg0, %c0_i32, %c0_i32_0 : i32, i32, i32
  }
}

</mosaic_0001>

<bundles_post_ra>
// kernel: lenet5_forward.1
= control target key start
LH: loop header
LB: loop body
LE: loop exit
PB: predicated region body
PF: predicated region fallthrough
CT: control target
= control target key end

     0   :  { %s3532_s0 = inlined_call_operand.vmem [shape: f32[2,32,32], index: 0, kind: input, shape index: {}]   ;;  %s3533_s1 = inlined_call_operand.vmem [shape: f32[5,32,168], index: 1, kind: input, shape index: {}]   ;;  %s3534_s2 = inlined_call_operand.vmem [shape: f32[1,168], index: 2, kind: input, shape index: {}]   ;;  %s3535_s3 = inlined_call_operand.vmem [shape: f32[14,28], index: 3, kind: input, shape index: {}]   ;;  %s3536_s4 = inlined_call_operand.vmem [shape: f32[168,84], index: 4, kind: input, shape index: {}]   ;;  %s3537_s5 = inlined_call_operand.vmem [shape: f32[5,84,160], index: 5, kind: input, shape index: {}]   ;;  %s3538_s6 = inlined_call_operand.vmem [shape: f32[1,160], index: 6, kind: input, shape index: {}]   ;;  %s3539_s7 = inlined_call_operand.vmem [shape: f32[5,10], index: 7, kind: input, shape index: {}]   ;;  %s3540_s8 = inlined_call_operand.vmem [shape: f32[160,80], index: 8, kind: input, shape index: {}]   ;;  %s3541_s9 = inlined_call_operand.vmem [shape: f32[5,80,120], index: 9, kind: input, shape index: {}]   ;;  %s3542_s10 = inlined_call_operand.vmem [shape: f32[1,120], index: 10, kind: input, shape index: {}]   ;;  %s3543_s11 = inlined_call_operand.vmem [shape: f32[120,84], index: 11, kind: input, shape index: {}]   ;;  %s3544_s12 = inlined_call_operand.vmem [shape: f32[1,84], index: 12, kind: input, shape index: {}]   ;;  %s3545_s13 = inlined_call_operand.vmem [shape: f32[84,128], index: 13, kind: input, shape index: {}]   ;;  %s3546_s14 = inlined_call_operand.vmem [shape: f32[1,128], index: 14, kind: input, shape index: {}]   ;;  %s3547_s15 = inlined_call_operand.hbm [shape: f32[2,1,128], index: 15, kind: output, shape index: {}]  }
   0x1   :  { %3556 = sst [smem:[#allocation12_spill]] %s3532_s0 }
   0x2   :  { %20 = vsyncpa [#allocation3], 0 }
   0x3   :  { %22 = vsyncpa [#allocation3 + $0x1], 0  ;;  %s2436_s18 = smov 0   ;;  %s2438_s19 = smov 0  }
   0x4   :  { %s2440_s20 = smov 0   ;;  %s2442_s21 = smov 0  }
   0x5 LB: > { %3557 = sst [smem:[#allocation5_spill]] %s2342_s18  ;;  %s2457_s22 = sadd.s32 4294967295, %s2354_s21   ;;  %s2354_s21 = sphi %s2442_s21, %s3571_s21   ;;  %s2350_s20 = sphi %s2440_s20, %s3573_s20   ;;  %s2346_s19 = sphi %s2438_s19, %s3575_s19   ;;  %s2342_s18 = sphi %s2436_s18, %s3574_s18  }
   0x6   : > { %3558 = sst [smem:[#allocation6_spill]] %s2350_s20  ;;  %s1955_s23 = sadd.s32 4294967294, %s2354_s21  }
   0x7   : > { %3559 = sst [smem:[#allocation7_spill]] %s2354_s21  ;;  %s2461_s24 = sadd.s32 1, %s2354_s21  }
   0x8   : > { %3560 = sst [smem:[#allocation8_spill]] %s2461_s24  ;;  %s355_s25 = sadd.s32 1, %s2350_s20 }
   0x9   : > { %s352_s26 = ssub.s32 %s2354_s21, %s2461_s24  ;;  %p365_p0 = scmp.ne.s32.totalorder %s2350_s20, %s2346_s19 }
   0xa   : > { %p353_p1 = scmp.eq.s32.totalorder %s352_s26, 0  ;;  %p366_p2 = scmp.eq.s32.totalorder %s2457_s22, 1 }
   0xb   : > { %p371_p3 = scmp.ne.s32.totalorder %s2346_s19, %s2342_s18  ;;  %p372_p4 = scmp.eq.s32.totalorder %s1955_s23, 1 }
   0xc   : > { %s2472_s27 = scalar_select %p353_p1, %s2350_s20, %s355_s25  }
   0xd   : > { %p2474_p5 = por %p366_p2, %p365_p0  ;;  %p2478_p6 = por %p372_p4, %p371_p3 }
   0xe   : > { %3561 = sst [smem:[#allocation9_spill]] %s2472_s27  ;;  %p1958_p7 = scmp.ge.s32.totalorder %s2354_s21, 1 }
   0xf   : > { %s3562_s28 = scalar_select %p2474_p5, 1, 0 }
  0x10   : > { %s3564_s29 = scalar_select %p2478_p6, 1, 0 }
  0x11   : > { %3563 = sst [smem:[#allocation10_spill]] %s3562_s28  ;;  %p440_p8 = scmp.lt.s32.totalorder %s2354_s21, 3 }
  0x12   : > { %3565 = sst [smem:[#allocation11_spill]] %s3564_s29 }
  0x13   : > { %p441_p9 = pnand %p1958_p7, %p440_p8 }
  0x14   : > { %p487_p10 = scmp.lt.s32.totalorder (!%p441_p9), %s2457_s22, 1  ;;  %s3566_s0 = sld [smem:[#allocation12_spill]] (!%p441_p9) }
  0x15   : > { %444 = sbr.rel (%p441_p9) target bundleno = 1673 (0x689), region = 80  ;;  %s485_s16 = sand.u32 (!%p441_p9), 1, %s2346_s19  }
  0x16   : > { %s1896_s25 = scalar_lea.hbm (!%p441_p9), %s3547_s15, %s2457_s22  ;;  %s486_s29 = scalar_lea.vmem (!%p441_p9), [#allocation2], %s485_s16 }
  0x17   : > { %s1898_s20 = sshll.u32 (!%p441_p9), %s486_s29, 4  ;;  %s1900_s27 = sshll.u32 (!%p441_p9), %s1896_s25, 4  ;;  %s1899_s20 = int_to_ptr.vmem [resolvable:$true] %s1898_s20  ;;  %s1901_s27 = int_to_ptr.hbm [resolvable:$true] %s1900_s27 }
  0x18   : > { %s1888_s24 = scalar_lea.sflag (!%p441_p9), [#allocation3], %s485_s16  ;;  %s2306_s21 = sshra.s32 (!%p441_p9), %s1901_s27, 4  ;;  %s2307_s21 = int_to_ptr.hbm [resolvable:$true] %s2306_s21 }
  0x19   : > { %s2308_s28 = scalar_lea.hbm (!%p441_p9), %s2307_s21, 1  ;;  %p2313_p0 = scmp.lt.s32.totalorder (!%p441_p9), %s2307_s21, %s3547_s15 }
  0x1a   : > { %v1967_v0 = vld [vmem:[%s3533_s1 + $0x70] sm:$0xff]  ;;  %v1968_v1 = vld [vmem:[%s3533_s1 + $0x78] sm:$0xff]  ;;  %v1965_v2 = vld [vmem:[%s3533_s1 + $0x60] sm:$0xff]  ;;  %s488_s26 = scalar_select %p487_p10, %s2457_s22, 1  ;;  %vm525_vm0 = vcmask 261120   ;;  %vm517_vm1 = vcmask 1046528  }
  0x1b   : > { %2213 = vmatpush.msra.mxu2 %v1967_v0  ;;  %546 = vmatpush.msra.mxu0 %v1967_v0  ;;  %v1966_v3 = vld [vmem:[%s3533_s1 + $0x68] sm:$0xff]  ;;  %v503_v4 = vld [vmem:[%s3533_s1 + $0x38] sm:$0xff]  ;;  %v1963_v5 = vld [vmem:[%s3533_s1 + $0x50] sm:$0xff]  ;;  %vm667_vm2 = vcmask 1045504   ;;  %vm758_vm3 = vcmask 1044480   ;;  %vm849_vm4 = vcmask 1043456   ;;  %p2309_p11 = scmp.ne.s32.totalorder %s2307_s21, %s2308_s28 }
  0x1c   : > { %575 = vmatpush.msra.mxu1 %v1968_v1  ;;  %2217 = vmatpush.msra.mxu3 %v503_v4  ;;  %v501_v6 = vld [vmem:[%s3533_s1 + $0x28] sm:$0xff]  ;;  %v1964_v7 = vld [vmem:[%s3533_s1 + $0x58] sm:$0xff]  ;;  %v1961_v9 = vld [vmem:[%s3533_s1 + $0x40] sm:$0xff]  ;;  %s2212_s17 = sshll.u32 %s488_s26, 5  ;;  %vm976_vm5 = vcmask 326656   ;;  %vm1047_vm6 = vcmask 228352  }
  0x1d   : > { %2214 = vmatpush.msra.mxu2 %v1965_v2  ;;  %547 = vmatpush.msra.mxu0 %v1965_v2  ;;  %v499_v8 = vld [vmem:[%s3533_s1 + $0x18] sm:$0xff]  ;;  %s491_s18 = scalar_lea.vmem %s3566_s0, %s2212_s17  ;;  %v1962_v10 = vld [vmem:[%s3533_s1 + $0x48] sm:$0xff]  ;;  %v502_v11 = vld [vmem:[%s3533_s1 + $0x30] sm:$0xff]  ;;  %vm1130_vm7 = vcmask 687104   ;;  %vm1592_vm8 = vcmask 1041408   ;;  %vm1588_vm9 = vcmask 80896   ;;  %p2310_p12 = pnand %p2309_p11, %p2474_p5 }
  0x1e   : > { %576 = vmatpush.msra.mxu1 %v1966_v3  ;;  %2218 = vmatpush.msra.mxu3 %v501_v6  ;;  %v497_v12 = vld [vmem:[%s3533_s1 + $0x8] sm:$0xff]  ;;  %v2528_v13 = vld [vmem:[%s491_s18 + $0x18] sm:$0xff]  ;;  %v2530_v14 = vld [vmem:[%s491_s18] sm:$0xff]  ;;  %vm1639_vm10 = vcmask 654336   ;;  %vm1808_vm11 = vcmask 982016   ;;  %vm1871_vm12 = vcmask 1040384  }
  0x1f   : > { %2215 = vmatpush.msra.mxu2 %v1963_v5  ;;  %548 = vmatpush.msra.mxu0 %v1963_v5  ;;  %v2532_v15 = vld [vmem:[%s491_s18 + $0x8] sm:$0xff]  ;;  %v2535_v16 = vrot.slane %v2528_v13, 1  ;;  %v518_v17 = vrot.slane %v2530_v14, 1  ;;  %v500_v19 = vld [vmem:[%s3533_s1 + $0x20] sm:$0xff]  ;;  %v2542_v20 = vld [vmem:[%s491_s18 + $0x10] sm:$0xff]  ;;  %v668_v44 = vrot.slane %v2530_v14, 2  ;;  %p2311_p13 = pneg %p2310_p12 }
  0x20   : > { %577 = vmatpush.msra.mxu1 %v1964_v7  ;;  %2219 = vmatpush.msra.mxu3 %v499_v8  ;;  %v519_v18 = vrot.slane %v2532_v15, 1  ;;  %v1991_v22 = vld [vmem:[%s3533_s1 + $0xb0] sm:$0xff]  ;;  %v2008_v24 = vld [vmem:[%s3533_s1 + $0xf8] sm:$0xff]  ;;  %v521_v25 = vrot.slane %v2542_v20, 1  ;;  %v1989_v26 = vld [vmem:[%s3533_s1 + $0xa0] sm:$0xff]  ;;  %v669_v45 = vrot.slane %v2532_v15, 2 }
  0x21   : > { %2216 = vmatpush.msra.mxu2 %v1961_v9  ;;  %549 = vmatpush.msra.mxu0 %v1961_v9  ;;  %v498_v23 = vld [vmem:[%s3533_s1 + $0x10] sm:$0xff]  ;;  %v496_v27 = vld [vmem:[%s3533_s1] sm:$0xff]  ;;  %v2006_v28 = vld [vmem:[%s3533_s1 + $0xe8] sm:$0xff]  ;;  %v759_v47 = vrot.slane %v2530_v14, 3  ;;  %v760_v48 = vrot.slane %v2532_v15, 3  ;;  %v671_v53 = vrot.slane %v2542_v20, 2 }
  0x22   : > { %578 = vmatpush.msra.mxu1 %v1962_v10  ;;  %1972 = vmatmul.msk.f32.vlgmr.msra.gmra.mxu2 %vm525_vm0, %v2535_v16  ;;  %v520_v21 = vsel %vm517_vm1, %v518_v17, %v519_v18  ;;  %v1987_v29 = vld [vmem:[%s3533_s1 + $0x90] sm:$0xff]  ;;  %v2004_v30 = vld [vmem:[%s3533_s1 + $0xd8] sm:$0xff]  ;;  %v522_v31 = vsel %vm517_vm1, %v519_v18, %v521_v25  ;;  %v1985_v32 = vld [vmem:[%s3533_s1 + $0x80] sm:$0xff]  ;;  %v524_v40 = vsel %vm517_vm1, %v521_v25, %v2535_v16  ;;  %v762_v54 = vrot.slane %v2542_v20, 3  ;;  %s2312_s22 = scalar_lea.hbm %s3547_s15, 2 }
  0x23   : > { %612 = vmatpush.msrb.mxu2 %v502_v11  ;;  %2220 = vmatpush.msra.mxu3 %v497_v12  ;;  %v2007_v33 = vld [vmem:[%s3533_s1 + $0xf0] sm:$0xff]  ;;  %v1992_v34 = vld [vmem:[%s3533_s1 + $0xb8] sm:$0xff]  ;;  %v2002_v35 = vld [vmem:[%s3533_s1 + $0xc8] sm:$0xff]  ;;  %v670_v50 = vsel %vm667_vm2, %v668_v44, %v669_v45  ;;  %v761_v51 = vsel %vm758_vm3, %v759_v47, %v760_v48  ;;  %v672_v55 = vsel %vm667_vm2, %v669_v45, %v671_v53  ;;  %v673_v59 = vrot.slane %v2528_v13, 2  ;;  %p2314_p1 = scmp.lt.s32.totalorder %s2312_s22, %s2308_s28 }
  0x24   : > { %1969 = vmatmul.msk.f32.vlgmr.msra.gmra.mxu0 %vm525_vm0, %v520_v21  ;;  %1973 = vmatmul.msk.f32.vlgmr.msra.gmra.mxu1 %vm525_vm0, %v520_v21  ;;  %v2005_v36 = vld [vmem:[%s3533_s1 + $0xe0] sm:$0xff]  ;;  %v1990_v37 = vld [vmem:[%s3533_s1 + $0xa8] sm:$0xff]  ;;  %v2003_v38 = vld [vmem:[%s3533_s1 + $0xd0] sm:$0xff]  ;;  %v763_v56 = vsel %vm758_vm3, %v760_v48, %v762_v54  ;;  %v764_v60 = vrot.slane %v2528_v13, 3  ;;  %v850_v1 = vrot.slane %v2530_v14, 4  ;;  %v851_v2 = vrot.slane %v2532_v15, 4 }
  0x25   : > { %613 = vmatpush.msrb.mxu2 %v500_v19  ;;  %1982 = vmatmul.msk.f32.vlgmr.msra.gmra.mxu3 %vm525_vm0, %v2532_v15  ;;  %v1988_v39 = vld [vmem:[%s3533_s1 + $0x98] sm:$0xff]  ;;  %v2001_v41 = vld [vmem:[%s3533_s1 + $0xc0] sm:$0xff]  ;;  %v1986_v42 = vld [vmem:[%s3533_s1 + $0x88] sm:$0xff]  ;;  %v674_v63 = vsel %vm667_vm2, %v671_v53, %v673_v59  ;;  %p2315_p2 = por %p2314_p1, %p2313_p0 }
  0x26   : > { %695 = vmatpush.msrb.mxu0 %v1991_v22  ;;  %641 = vmatpush.msrb.mxu1 %v503_v4  ;;  %v2023_v43 = vld [vmem:[%s3533_s1 + $0x130] sm:$0xff]  ;;  %v2021_v46 = vld [vmem:[%s3533_s1 + $0x120] sm:$0xff]  ;;  %v2024_v57 = vld [vmem:[%s3533_s1 + $0x138] sm:$0xff]  ;;  %v765_v0 = vsel %vm758_vm3, %v762_v54, %v764_v60  ;;  %v852_v3 = vsel %vm849_vm4, %v850_v1, %v851_v2  ;;  %v853_v4 = vrot.slane %v2542_v20, 4 }
  0x27   : > { %614 = vmatpush.msrb.mxu2 %v498_v23  ;;  %815 = vmatpush.msrb.mxu3 %v2008_v24  ;;  %v2019_v49 = vld [vmem:[%s3533_s1 + $0x110] sm:$0xff]  ;;  %v2017_v52 = vld [vmem:[%s3533_s1 + $0x100] sm:$0xff]  ;;  %v2022_v58 = vld [vmem:[%s3533_s1 + $0x128] sm:$0xff]  ;;  %p2316_p3 = pnand %p2315_p2, %p2311_p13 }
  0x28   : > { %696 = vmatpush.msrb.mxu0 %v1989_v26  ;;  %642 = vmatpush.msrb.mxu1 %v501_v6  ;;  %v2020_v61 = vld [vmem:[%s3533_s1 + $0x118] sm:$0xff]  ;;  %v2018_v62 = vld [vmem:[%s3533_s1 + $0x108] sm:$0xff]  ;;  %v854_v5 = vsel %vm849_vm4, %v851_v2, %v853_v4  ;;  %v855_v6 = vrot.slane %v2528_v13, 4  ;;  %v965_v19 = vld [vmem:[%s3536_s4 + $0x50] sm:$0xff] }
  0x29   : > { %615 = vmatpush.msrb.mxu2 %v496_v27  ;;  %816 = vmatpush.msrb.mxu3 %v2006_v28  ;;  %v970_v10 = vld [vmem:[%s3536_s4 + $0x78] sm:$0xff]  ;;  %v964_v22 = vld [vmem:[%s3536_s4 + $0x48] sm:$0xff]  ;;  %v963_v23 = vld [vmem:[%s3536_s4 + $0x40] sm:$0xff] }
  0x2a   : > { %697 = vmatpush.msrb.mxu0 %v1987_v29  ;;  %643 = vmatpush.msrb.mxu1 %v499_v8  ;;  %v856_v7 = vsel %vm849_vm4, %v853_v4, %v855_v6  ;;  %v966_v17 = vld [vmem:[%s3536_s4 + $0x58] sm:$0xff]  ;;  %v961_v26 = vld [vmem:[%s3536_s4 + $0x30] sm:$0xff]  ;;  %v960_v29 = vld [vmem:[%s3536_s4 + $0x28] sm:$0xff] }
  0x2b   : > { %1977 = vmatmul.msk.f32.vlgmr.msrb.gmra.mxu2 %vm525_vm0, %v2530_v14  ;;  %817 = vmatpush.msrb.mxu3 %v2004_v30  ;;  %v962_v24 = vld [vmem:[%s3536_s4 + $0x38] sm:$0xff]  ;;  %v959_v30 = vld [vmem:[%s3536_s4 + $0x20] sm:$0xff] }
  0x2c   : > { %1970 = vmatmul.msk.f32.gmra.mxu0 %vm525_vm0, %v522_v31  ;;  %1974 = vmatmul.msk.f32.gmra.mxu1 %vm525_vm0, %v522_v31  ;;  %v958_v31 = vld [vmem:[%s3536_s4 + $0x18] sm:$0xff] }
  0x2d   : > { %1983 = vmatmul.msk.f32.gmra.mxu3 %vm525_vm0, %v2542_v20  ;;  %698 = vmatpush.msrb.mxu0 %v1985_v32  ;;  %v974_v45 = vld [vmem:[%s3536_s4 + $0x98] sm:$0xff] }
  0x2e   : > { %644 = vmatpush.msrb.mxu1 %v497_v12  ;;  %786 = vmatpush.msra.mxu2 %v2007_v33  ;;  %v969_v12 = vld [vmem:[%s3536_s4 + $0x70] sm:$0xff] }
  0x2f   : > { %818 = vmatpush.msrb.mxu3 %v2002_v35  ;;  %877 = vmatpush.msra.mxu0 %v2023_v43  ;;  %v957_v33 = vld [vmem:[%s3536_s4 + $0x10] sm:$0xff]  ;;  %v975_v43 = vld [vmem:[%s3536_s4 + $0xa0] sm:$0xff] }
  0x30   : > { %724 = vmatpush.msra.mxu1 %v1992_v34  ;;  %787 = vmatpush.msra.mxu2 %v2005_v36  ;;  %v956_v36 = vld [vmem:[%s3536_s4 + $0x8] sm:$0xff] }
  0x31   : > { %878 = vmatpush.msra.mxu0 %v2021_v46  ;;  %1029 = vmatpush.msra.mxu3 %v975_v43  ;;  %v973_v46 = vld [vmem:[%s3536_s4 + $0x90] sm:$0xff] }
  0x32   : > { %725 = vmatpush.msra.mxu1 %v1990_v37  ;;  %788 = vmatpush.msra.mxu2 %v2003_v38  ;;  %v955_v38 = vld [vmem:[%s3536_s4] sm:$0xff] }
  0x33   : > { %1978 = vmatmul.msk.f32.gmra.mxu2 %vm525_vm0, %v2532_v15  ;;  %879 = vmatpush.msra.mxu0 %v2019_v49  ;;  %v968_v15 = vld [vmem:[%s3536_s4 + $0x68] sm:$0xff] }
  0x34   : > { %726 = vmatpush.msra.mxu1 %v1988_v39  ;;  %1971 = vmatmul.msk.f32.gmra.mxu0 %vm525_vm0, %v524_v40  ;;  %v972_v49 = vld [vmem:[%s3536_s4 + $0x88] sm:$0xff] }
  0x35   : > { %1975 = vmatmul.msk.f32.gmra.mxu1 %vm525_vm0, %v524_v40  ;;  %1984 = vmatmul.msk.f32.gmra.mxu3 %vm525_vm0, %v2528_v13 }
  0x36   : > { %789 = vmatpush.msra.mxu2 %v2001_v41  ;;  %727 = vmatpush.msra.mxu1 %v1986_v42 }
  0x37   : > { %880 = vmatpush.msra.mxu0 %v2017_v52  ;;  %1030 = vmatpush.msra.mxu3 %v974_v45  ;;  %v931_v52 = vld [vmem:[%s3534_s2] sm:$0x3] }
  0x38   : > { %989 = vmatpush.msrb.mxu2 %v970_v10 }
  0x39   : > { %1031 = vmatpush.msra.mxu3 %v973_v46 }
  0x3a   : > { %990 = vmatpush.msrb.mxu2 %v969_v12 }
  0x3b   : > { %1979 = vmatmul.msk.f32.gmra.mxu2 %vm525_vm0, %v2542_v20  ;;  %1032 = vmatpush.msra.mxu3 %v972_v49 }
  0x3c   : > { %1993 = vmatmul.msk.f32.vlgmr.msrb.gmra.mxu0 %vm525_vm0, %v670_v50  ;;  %991 = vmatpush.msrb.mxu2 %v968_v15 }
  0x3d   : > { %1976 = vmatmul.msk.f32.gmra.mxu1 %vm525_vm0, %v2535_v16  ;;  %2013 = vmatmul.msk.f32.vlgmr.msrb.gmra.mxu3 %vm525_vm0, %v761_v51  ;;  %v967_v16 = vld [vmem:[%s3536_s4 + $0x60] sm:$0xff] }
  0x3e   : > { %992 = vmatpush.msrb.mxu2 %v967_v16 }
  0x40   : > { %993 = vmatpush.msrb.mxu2 %v966_v17 }
  0x42   : > { %994 = vmatpush.msrb.mxu2 %v965_v19 }
  0x43   : > { %1980 = vmatmul.msk.f32.gmra.mxu2 %vm525_vm0, %v2528_v13 }
  0x44   : > { %1994 = vmatmul.msk.f32.gmra.mxu0 %vm525_vm0, %v672_v55  ;;  %995 = vmatpush.msrb.mxu2 %v964_v22 }
  0x45   : > { %1981 = vmatmul.msk.f32.vlgmr.msrb.gmra.mxu1 %vm525_vm0, %v2530_v14  ;;  %2014 = vmatmul.msk.f32.gmra.mxu3 %vm525_vm0, %v763_v56 }
  0x46   : > { %906 = vmatpush.msrb.mxu1 %v2024_v57  ;;  %996 = vmatpush.msrb.mxu2 %v963_v23  ;;  %v933_v57 = vperm.slane %v931_v52, 0 }
  0x48   : > { %907 = vmatpush.msrb.mxu1 %v2022_v58  ;;  %997 = vmatpush.msrb.mxu2 %v962_v24 }
  0x4a   : > { %908 = vmatpush.msrb.mxu1 %v2020_v61  ;;  %998 = vmatpush.msrb.mxu2 %v961_v26 }
  0x4b   : > { %2009 = vmatmul.msk.f32.vlgmr.msra.gmra.mxu2 %vm525_vm0, %v761_v51  ;;  %v971_v51 = vld [vmem:[%s3536_s4 + $0x80] sm:$0xff] }
  0x4c   : > { %909 = vmatpush.msrb.mxu1 %v2018_v62  ;;  %1995 = vmatmul.msk.f32.gmra.mxu0 %vm525_vm0, %v674_v63 }
  0x4d   : > { %1997 = vmatmul.msk.f32.vlgmr.msra.gmra.mxu1 %vm525_vm0, %v670_v50  ;;  %2015 = vmatmul.msk.f32.gmra.mxu3 %vm525_vm0, %v765_v0 }
  0x4e   : > { %999 = vmatpush.msrb.mxu2 %v960_v29  ;;  %1033 = vmatpush.msra.mxu3 %v971_v51 }
  0x50   : > { %1000 = vmatpush.msrb.mxu2 %v959_v30 }
  0x52   : > { %1001 = vmatpush.msrb.mxu2 %v958_v31 }
  0x53   : > { %2010 = vmatmul.msk.f32.gmra.mxu2 %vm525_vm0, %v763_v56 }
  0x54   : > { %1996 = vmatmul.msk.f32.gmra.mxu0 %vm525_vm0, %v673_v59  ;;  %1002 = vmatpush.msrb.mxu2 %v957_v33 }
  0x55   : > { %1998 = vmatmul.msk.f32.gmra.mxu1 %vm525_vm0, %v672_v55  ;;  %2016 = vmatmul.msk.f32.gmra.mxu3 %vm525_vm0, %v764_v60 }
  0x56   : > { %1003 = vmatpush.msrb.mxu2 %v956_v36 }
  0x58   : > { %1004 = vmatpush.msrb.mxu2 %v955_v38 }
  0x5b   : > { %2011 = vmatmul.msk.f32.gmra.mxu2 %vm525_vm0, %v765_v0 }
  0x5c   : > { %2025 = vmatmul.msk.f32.vlgmr.msra.gmra.mxu0 %vm525_vm0, %v852_v3 }
  0x5d   : > { %1999 = vmatmul.msk.f32.gmra.mxu1 %vm525_vm0, %v674_v63 }
  0x63   : > { %2012 = vmatmul.msk.f32.gmra.mxu2 %vm525_vm0, %v764_v60 }
  0x64   : > { %2026 = vmatmul.msk.f32.gmra.mxu0 %vm525_vm0, %v854_v5 }
  0x65   : > { %2000 = vmatmul.msk.f32.gmra.mxu1 %vm525_vm0, %v673_v59 }
  0x6c   : > { %2027 = vmatmul.msk.f32.gmra.mxu0 %vm525_vm0, %v856_v7 }
  0x6d   : > { %2029 = vmatmul.msk.f32.vlgmr.msrb.gmra.mxu1 %vm525_vm0, %v852_v3 }
  0x74   : > { %2028 = vmatmul.msk.f32.gmra.mxu0 %vm525_vm0, %v855_v6 }
  0x75   : > { %2030 = vmatmul.msk.f32.gmra.mxu1 %vm525_vm0, %v854_v5 }
  0x7d   : > { %2031 = vmatmul.msk.f32.gmra.mxu1 %vm525_vm0, %v856_v7 }
  0x85   : > { %2032 = vmatmul.msk.f32.gmra.mxu1 %vm525_vm0, %v855_v6 }
  0xa1   : > { %v551_v8 = vpop.f32.mrf.mxu0  ;;  %v2698_v9 = vpop.f32.mrf.mxu1 }
  0xa5   : > { %v2703_v11 = vpop.f32.mrf.mxu2 }
  0xa8   : > { %v649_v37 = vpop.f32.mrf.mxu3 }
  0xa9   : > { %v2708_v13 = vpop.f32.mrf.mxu0  ;;  %v2710_v14 = vpop.f32.mrf.mxu1 }
  0xaa   : > { %v650_v23 = vadd.f32 %v649_v37, %v2710_v14 }
  0xae   : > { %v617_v18 = vpop.f32.mrf.mxu2 }
  0xaf   : > { %v618_v50 = vadd.f32 %v617_v18, %v551_v8  ;;  %v934_v18 = vperm.slane %v931_v52, 1 }
  0xb0   : > { %v2760_v42 = vpop.f32.mrf.mxu3 }
  0xb1   : > { %v2724_v20 = vpop.f32.mrf.mxu0 }
  0xb2   : > { %v2726_v21 = vpop.f32.mrf.mxu1 }
  0xb3   : > { %v653_v14 = vadd.f32 %v2760_v42, %v2726_v21 }
  0xb6   : > { %v620_v25 = vpop.f32.mrf.mxu2 }
  0xb7   : > { %v621_v61 = vadd.f32 %v620_v25, %v2708_v13 }
  0xb8   : > { %v2780_v53 = vpop.f32.mrf.mxu3 }
  0xb9   : > { %v700_v28 = vpop.f32.mrf.mxu0 }
  0xba   : > { %v2740_v27 = vpop.f32.mrf.mxu1  ;;  %v741_v54 = vadd.f32 %v700_v28, %v618_v50 }
  0xbb   : > { %v656_v46 = vadd.f32 %v2780_v53, %v2740_v27 }
  0xbe   : > { %v623_v32 = vpop.f32.mrf.mxu2 }
  0xbf   : > { %v624_v8 = vadd.f32 %v623_v32, %v2724_v20 }
  0xc0   : > { %v820_v0 = vpop.f32.mrf.mxu3 }
  0xc1   : > { %v703_v35 = vpop.f32.mrf.mxu0 }
  0xc2   : > { %v646_v34 = vpop.f32.mrf.mxu1  ;;  %v743_v63 = vadd.f32 %v703_v35, %v621_v61  ;;  %v1098_v61 = vld [vmem:[%s3537_s5 + $0x90] sm:$0xff] }
  0xc3   : > { %v647_v4 = vadd.f32 %v646_v34, %v2698_v9 }
  0xc6   : > { %v626_v39 = vpop.f32.mrf.mxu2 }
  0xc7   : > { %v627_v26 = vadd.f32 %v626_v39, %v2703_v11 }
  0xc8   : > { %v823_v16 = vpop.f32.mrf.mxu3 }
  0xc9   : > { %v706_v40 = vpop.f32.mrf.mxu0 }
  0xca   : > { %v729_v41 = vpop.f32.mrf.mxu1  ;;  %v745_v15 = vadd.f32 %v706_v40, %v624_v8  ;;  %v1092_v8 = vld [vmem:[%s3537_s5 + $0x60] sm:$0xff] }
  0xcb   : > { %v742_v10 = vadd.f32 %v729_v41, %v647_v4  ;;  %v1094_v4 = vld [vmem:[%s3537_s5 + $0x70] sm:$0xff] }
  0xcd   : > { %v833_v13 = vadd.f32 %v820_v0, %v742_v10  ;;  %v2061_v0 = vld [vmem:[%s3537_s5 + $0x158] sm:$0xf]  ;;  %v2054_v10 = vld [vmem:[%s3537_s5 + $0x120] sm:$0xff] }
  0xce   : > { %v791_v44 = vpop.f32.mrf.mxu2  ;;  %2065 = vmatpush.msk.msra.mxu2 %vm849_vm4, %v2061_v0  ;;  %v2090_v0 = vld [vmem:[%s3537_s5 + $0x1e0] sm:$0xff] }
  0xcf   : > { %v832_v55 = vadd.f32 %v791_v44, %v741_v54 }
  0xd0   : > { %v826_v38 = vpop.f32.mrf.mxu3 }
  0xd1   : > { %v709_v47 = vpop.f32.mrf.mxu0 }
  0xd2   : > { %v732_v48 = vpop.f32.mrf.mxu1  ;;  %v747_v31 = vadd.f32 %v709_v47, %v627_v26  ;;  %v1084_v26 = vld [vmem:[%s3537_s5 + $0x20] sm:$0xff] }
  0xd3   : > { %v744_v28 = vadd.f32 %v732_v48, %v650_v23  ;;  %v2048_v23 = vld [vmem:[%s3537_s5 + $0xf0] sm:$0xff] }
  0xd5   : > { %v835_v32 = vadd.f32 %v823_v16, %v744_v28  ;;  %v2053_v16 = vld [vmem:[%s3537_s5 + $0x118] sm:$0xff] }
  0xd6   : > { %v794_v56 = vpop.f32.mrf.mxu2 }
  0xd7   : > { %v834_v1 = vadd.f32 %v794_v56, %v743_v63  ;;  %v2060_v63 = vld [vmem:[%s3537_s5 + $0x150] sm:$0xf] }
  0xd8   : > { %v829_v50 = vpop.f32.mrf.mxu3  ;;  %2062 = vmatpush.msk.msra.mxu1 %vm849_vm4, %v2060_v63  ;;  %v2115_v63 = vld [vmem:[%s3537_s5 + $0x278] sm:$0xff] }
  0xd9   : > { %v882_v59 = vpop.f32.mrf.mxu0 }
  0xda   : > { %v735_v58 = vpop.f32.mrf.mxu1  ;;  %v923_v60 = vadd.f32 %v882_v59, %v832_v55 }
  0xdb   : > { %v746_v39 = vadd.f32 %v735_v58, %v653_v14  ;;  %v2122_v14 = vld [vmem:[%s3537_s5 + $0x2b0] sm:$0xf] }
  0xdc   : > { %v937_v62 = vadd.f32 %v933_v57, %v923_v60  ;;  %v1100_v60 = vld [vmem:[%s3537_s5 + $0xa0] sm:$0xf] }
  0xdd   : > { %v837_v44 = vadd.f32 %v826_v38, %v746_v39  ;;  %2068 = vmatpush.msk.msrb.mxu3 %vm849_vm4, %v1100_v60  ;;  %v2120_v39 = vld [vmem:[%s3537_s5 + $0x2a0] sm:$0xff]  ;;  %v2092_v60 = vld [vmem:[%s3537_s5 + $0x1f0] sm:$0xff] }
  0xde   : > { %2260 = vtanh.f32 %v937_v62  ;;  %v797_v6 = vpop.f32.mrf.mxu2  ;;  %v1096_v62 = vld [vmem:[%s3537_s5 + $0x80] sm:$0xff] }
  0xdf   : > { %v836_v17 = vadd.f32 %v797_v6, %v745_v15  ;;  %1203 = vmatpush.msrb.mxu3 %v1098_v61  ;;  %v2057_v6 = vld [vmem:[%s3537_s5 + $0x138] sm:$0xff]  ;;  %v1090_v15 = vld [vmem:[%s3537_s5 + $0x50] sm:$0xff] }
  0xe0   : > { %v2093_v61 = vld [vmem:[%s3537_s5 + $0x1f8] sm:$0xff] }
  0xe1   : > { %v885_v3 = vpop.f32.mrf.mxu0  ;;  %1204 = vmatpush.msrb.mxu3 %v1096_v62  ;;  %v2114_v62 = vld [vmem:[%s3537_s5 + $0x270] sm:$0xff] }
  0xe2   : > { %v738_v2 = vpop.f32.mrf.mxu1  ;;  %v925_v5 = vadd.f32 %v885_v3, %v834_v1  ;;  %v2058_v1 = vld [vmem:[%s3537_s5 + $0x140] sm:$0xff] }
  0xe3   : > { %v748_v47 = vadd.f32 %v738_v2, %v656_v46  ;;  %v2059_v2 = vld [vmem:[%s3537_s5 + $0x148] sm:$0xff]  ;;  %1147 = vmatpush.msra.mxu1 %v2058_v1  ;;  %1205 = vmatpush.msrb.mxu3 %v1094_v4  ;;  %v2088_v4 = vld [vmem:[%s3537_s5 + $0x1d0] sm:$0xff] }
  0xe4   : > { %v2261_v7 = vpop.eup %2260  ;;  %v939_v12 = vadd.f32 %v933_v57, %v925_v5  ;;  %v2056_v5 = vld [vmem:[%s3537_s5 + $0x130] sm:$0xff]  ;;  %1170 = vmatpush.msra.mxu2 %v2059_v2  ;;  %v1093_v46 = vld [vmem:[%s3537_s5 + $0x68] sm:$0xff]  ;;  %v2112_v2 = vld [vmem:[%s3537_s5 + $0x260] sm:$0xff] }
  0xe5   : > { %1005 = vmatmul.f32.vlgmr.msrb.gmra.mxu2 %v2261_v7  ;;  %v839_v51 = vadd.f32 %v829_v50, %v748_v47  ;;  %1148 = vmatpush.msra.mxu1 %v2056_v5  ;;  %v1087_v47 = vld [vmem:[%s3537_s5 + $0x38] sm:$0xff]  ;;  %v1081_v50 = vld [vmem:[%s3537_s5 + $0x8] sm:$0xff] }
  0xe6   : > { %2262 = vtanh.f32 %v939_v12  ;;  %v800_v30 = vpop.f32.mrf.mxu2  ;;  %v2055_v12 = vld [vmem:[%s3537_s5 + $0x128] sm:$0xff]  ;;  %1171 = vmatpush.msra.mxu2 %v2057_v6  ;;  %1206 = vmatpush.msrb.mxu3 %v1092_v8  ;;  %v2089_v5 = vld [vmem:[%s3537_s5 + $0x1d8] sm:$0xff]  ;;  %v2110_v6 = vld [vmem:[%s3537_s5 + $0x250] sm:$0xff] }
  0xe7   : > { %v838_v33 = vadd.f32 %v800_v30, %v747_v31  ;;  %1149 = vmatpush.msra.mxu1 %v2054_v10  ;;  %v1082_v30 = vld [vmem:[%s3537_s5 + $0x10] sm:$0xff]  ;;  %v2091_v1 = vld [vmem:[%s3537_s5 + $0x1e8] sm:$0xff]  ;;  %v2086_v8 = vld [vmem:[%s3537_s5 + $0x1c0] sm:$0xff] }
  0xe8   : > { %1172 = vmatpush.msra.mxu2 %v2055_v12  ;;  %1207 = vmatpush.msrb.mxu3 %v1090_v15  ;;  %v2087_v10 = vld [vmem:[%s3537_s5 + $0x1c8] sm:$0xff]  ;;  %v2108_v12 = vld [vmem:[%s3537_s5 + $0x240] sm:$0xff] }
  0xe9   : > { %v888_v19 = vpop.f32.mrf.mxu0  ;;  %v2109_v15 = vld [vmem:[%s3537_s5 + $0x248] sm:$0xff] }
  0xea   : > { %v911_v22 = vpop.f32.mrf.mxu1  ;;  %v927_v24 = vadd.f32 %v888_v19, %v836_v17  ;;  %v1088_v17 = vld [vmem:[%s3537_s5 + $0x40] sm:$0xff]  ;;  %v2051_v19 = vld [vmem:[%s3537_s5 + $0x108] sm:$0xff]  ;;  %1173 = vmatpush.msra.mxu2 %v2053_v16  ;;  %v2085_v16 = vld [vmem:[%s3537_s5 + $0x1b8] sm:$0xff] }
  0xeb   : > { %v924_v9 = vadd.f32 %v911_v22, %v833_v13  ;;  %v2052_v13 = vld [vmem:[%s3537_s5 + $0x110] sm:$0xff]  ;;  %1208 = vmatpush.msrb.mxu3 %v1088_v17 }
  0xec   : > { %v2263_v25 = vpop.eup %2262  ;;  %v941_v20 = vadd.f32 %v933_v57, %v927_v24  ;;  %1150 = vmatpush.msra.mxu1 %v2052_v13  ;;  %v1086_v22 = vld [vmem:[%s3537_s5 + $0x30] sm:$0xff]  ;;  %v2049_v24 = vld [vmem:[%s3537_s5 + $0xf8] sm:$0xff]  ;;  %1174 = vmatpush.msra.mxu2 %v2051_v19  ;;  %v2082_v19 = vld [vmem:[%s3537_s5 + $0x1a0] sm:$0xff] }
  0xed   : > { %v938_v29 = vadd.f32 %v934_v18, %v924_v9  ;;  %1008 = vmatmul.f32.gmra.mxu2 %v2263_v25  ;;  %1209 = vmatpush.msrb.mxu3 %v1086_v22  ;;  %v2084_v13 = vld [vmem:[%s3537_s5 + $0x1b0] sm:$0xff]  ;;  %v2083_v22 = vld [vmem:[%s3537_s5 + $0x1a8] sm:$0xff] }
  0xee   : > { %2264 = vtanh.f32 %v941_v20  ;;  %v2046_v20 = vld [vmem:[%s3537_s5 + $0xe0] sm:$0xff]  ;;  %1175 = vmatpush.msra.mxu2 %v2049_v24  ;;  %v2106_v17 = vld [vmem:[%s3537_s5 + $0x230] sm:$0xff]  ;;  %v2105_v24 = vld [vmem:[%s3537_s5 + $0x228] sm:$0xff] }
  0xef   : > { %2266 = vtanh.f32 %v938_v29  ;;  %v2047_v29 = vld [vmem:[%s3537_s5 + $0xe8] sm:$0xff]  ;;  %1210 = vmatpush.msrb.mxu3 %v1084_v26  ;;  %v2102_v26 = vld [vmem:[%s3537_s5 + $0x210] sm:$0xff] }
  0xf0   : > { %1176 = vmatpush.msra.mxu2 %v2047_v29  ;;  %v2079_v29 = vld [vmem:[%s3537_s5 + $0x188] sm:$0xff] }
  0xf1   : > { %v891_v34 = vpop.f32.mrf.mxu0  ;;  %1211 = vmatpush.msrb.mxu3 %v1082_v30  ;;  %v2076_v30 = vld [vmem:[%s3537_s5 + $0x170] sm:$0xff] }
  0xf2   : > { %v914_v35 = vpop.f32.mrf.mxu1  ;;  %v929_v36 = vadd.f32 %v891_v34, %v838_v33  ;;  %v2045_v33 = vld [vmem:[%s3537_s5 + $0xd8] sm:$0xff]  ;;  %v1080_v34 = vld [vmem:[%s3537_s5] sm:$0xff] }
  0xf3   : > { %v926_v37 = vadd.f32 %v914_v35, %v835_v32  ;;  %v2044_v32 = vld [vmem:[%s3537_s5 + $0xd0] sm:$0xff]  ;;  %1177 = vmatpush.msra.mxu2 %v2045_v33  ;;  %1212 = vmatpush.msrb.mxu3 %v1080_v34  ;;  %v2075_v33 = vld [vmem:[%s3537_s5 + $0x168] sm:$0xff] }
  0xf4   : > { %v2265_v11 = vpop.eup %2264  ;;  %v943_v40 = vadd.f32 %v933_v57, %v929_v36  ;;  %v2042_v36 = vld [vmem:[%s3537_s5 + $0xc0] sm:$0xff] }
  0xf5   : > { %v940_v41 = vadd.f32 %v934_v18, %v926_v37  ;;  %v2267_v43 = vpop.eup %2266  ;;  %1011 = vmatmul.f32.gmra.mxu2 %v2265_v11  ;;  %v2043_v37 = vld [vmem:[%s3537_s5 + $0xc8] sm:$0xff]  ;;  %v953_v11 = vld [vmem:[%s3535_s3] sm:$0xff] }
  0xf6   : > { %2268 = vtanh.f32 %v943_v40  ;;  %2033 = vmatmul.msk.f32.vlgmr.msra.gmra.mxu3 %vm976_vm5, %v2267_v43  ;;  %v1101_v40 = vld [vmem:[%s3537_s5 + $0xa8] sm:$0xf]  ;;  %1178 = vmatpush.msra.mxu2 %v2043_v37  ;;  %v2150_v37 = vld [vmem:[%s3537_s5 + $0x360] sm:$0xf] }
  0xf7   : > { %2270 = vtanh.f32 %v940_v41  ;;  %2124 = vmatpush.msk.msra.mxu3 %vm849_vm4, %v2122_v14  ;;  %v1099_v41 = vld [vmem:[%s3537_s5 + $0x98] sm:$0xff]  ;;  %v1097_v43 = vld [vmem:[%s3537_s5 + $0x88] sm:$0xff] }
  0xf9   : > { %1371 = vmatpush.msra.mxu3 %v2120_v39 }
  0xfa   : > { %v917_v45 = vpop.f32.mrf.mxu1 }
  0xfb   : > { %v928_v21 = vadd.f32 %v917_v45, %v837_v44  ;;  %v1095_v44 = vld [vmem:[%s3537_s5 + $0x78] sm:$0xff]  ;;  %v954_v45 = vld [vmem:[%s3535_s3 + $0x8] sm:$0x3f] }
  0xfc   : > { %v2269_v42 = vpop.eup %2268 }
  0xfd   : > { %v942_v48 = vadd.f32 %v934_v18, %v928_v21  ;;  %v2271_v49 = vpop.eup %2270  ;;  %1014 = vmatmul.f32.gmra.mxu2 %v2269_v42  ;;  %v1091_v21 = vld [vmem:[%s3537_s5 + $0x58] sm:$0xff]  ;;  %v1089_v42 = vld [vmem:[%s3537_s5 + $0x48] sm:$0xff] }
  0xfe   : > { %2034 = vmatmul.msk.f32.gmra.mxu3 %vm976_vm5, %v2271_v49  ;;  %v1083_v49 = vld [vmem:[%s3537_s5 + $0x18] sm:$0xff] }
  0xff   : > { %2272 = vtanh.f32 %v942_v48  ;;  %v1085_v48 = vld [vmem:[%s3537_s5 + $0x28] sm:$0xff] }
 0x102   : > { %v920_v52 = vpop.f32.mrf.mxu1 }
 0x103   : > { %v930_v54 = vadd.f32 %v920_v52, %v839_v51  ;;  %v2123_v51 = vld [vmem:[%s3537_s5 + $0x2b8] sm:$0xf]  ;;  %v2121_v52 = vld [vmem:[%s3537_s5 + $0x2a8] sm:$0xff] }
 0x105   : > { %v2273_v55 = vpop.eup %2272  ;;  %v944_v56 = vadd.f32 %v934_v18, %v930_v54  ;;  %v2050_v18 = vld [vmem:[%s3537_s5 + $0x100] sm:$0xff]  ;;  %v2118_v54 = vld [vmem:[%s3537_s5 + $0x290] sm:$0xff] }
 0x106   : > { %2035 = vmatmul.msk.f32.gmra.mxu3 %vm976_vm5, %v2273_v55  ;;  %1151 = vmatpush.msra.mxu1 %v2050_v18  ;;  %v2119_v55 = vld [vmem:[%s3537_s5 + $0x298] sm:$0xff] }
 0x107   : > { %2274 = vtanh.f32 %v944_v56  ;;  %1372 = vmatpush.msra.mxu3 %v2118_v54  ;;  %v2040_v56 = vld [vmem:[%s3537_s5 + $0xb0] sm:$0xff]  ;;  %v2107_v18 = vld [vmem:[%s3537_s5 + $0x238] sm:$0xff]  ;;  %v2138_v54 = vld [vmem:[%s3537_s5 + $0x300] sm:$0xff] }
 0x108   : > { %1152 = vmatpush.msra.mxu1 %v2048_v23  ;;  %v2104_v23 = vld [vmem:[%s3537_s5 + $0x220] sm:$0xff] }
 0x10a   : > { %1153 = vmatpush.msra.mxu1 %v2046_v20  ;;  %v2078_v20 = vld [vmem:[%s3537_s5 + $0x180] sm:$0xff] }
 0x10c   : > { %1154 = vmatpush.msra.mxu1 %v2044_v32  ;;  %v2074_v32 = vld [vmem:[%s3537_s5 + $0x160] sm:$0xff] }
 0x10d   : > { %v2275_v57 = vpop.eup %2274 }
 0x10e   : > { %2036 = vmatmul.msk.f32.gmra.mxu3 %vm976_vm5, %v2275_v57  ;;  %1155 = vmatpush.msra.mxu1 %v2042_v36  ;;  %v2041_v57 = vld [vmem:[%s3537_s5 + $0xb8] sm:$0xff] }
 0x10f   : > { %1179 = vmatpush.msra.mxu2 %v2041_v57  ;;  %v2136_v57 = vld [vmem:[%s3537_s5 + $0x2f0] sm:$0xff] }
 0x110   : > { %1156 = vmatpush.msra.mxu1 %v2040_v56 }
 0x168   : > { %v2795_v27 = vpop.f32.mrf.mxu2 }
 0x170   : > { %v2799_v58 = vpop.f32.mrf.mxu2 }
 0x178   : > { %v1012_v3 = vpop.f32.mrf.mxu2 }
 0x179   : > { %v2797_v53 = vpop.f32.mrf.mxu3 }
 0x17a   : > { %v1036_v38 = vadd.f32 %v2797_v53, %v2795_v27  ;;  %v2094_v27 = vld [vmem:[%s3537_s5 + $0x200] sm:$0xf]  ;;  %v2095_v53 = vld [vmem:[%s3537_s5 + $0x208] sm:$0xf] }
 0x17b   : > { %2096 = vmatpush.msk.msrb.mxu1 %vm849_vm4, %v2094_v27  ;;  %2099 = vmatpush.msk.msrb.mxu2 %vm849_vm4, %v2095_v53  ;;  %v2137_v27 = vld [vmem:[%s3537_s5 + $0x2f8] sm:$0xff]  ;;  %v2134_v53 = vld [vmem:[%s3537_s5 + $0x2e0] sm:$0xff] }
 0x17d   : > { %1285 = vmatpush.msrb.mxu1 %v2092_v60  ;;  %1308 = vmatpush.msrb.mxu2 %v2093_v61  ;;  %v2133_v60 = vld [vmem:[%s3537_s5 + $0x2d8] sm:$0xff]  ;;  %v2130_v61 = vld [vmem:[%s3537_s5 + $0x2c0] sm:$0xff] }
 0x17f   : > { %1286 = vmatpush.msrb.mxu1 %v2090_v0  ;;  %1309 = vmatpush.msrb.mxu2 %v2091_v1 }
 0x180   : > { %v1015_v9 = vpop.f32.mrf.mxu2 }
 0x181   : > { %v1038_v59 = vpop.f32.mrf.mxu3  ;;  %1287 = vmatpush.msrb.mxu1 %v2088_v4  ;;  %1310 = vmatpush.msrb.mxu2 %v2089_v5  ;;  %v1529_v4 = vld [vmem:[%s3540_s8 + $0x68] sm:$0xff]  ;;  %v1528_v5 = vld [vmem:[%s3540_s8 + $0x60] sm:$0xff] }
 0x182   : > { %v1039_v35 = vadd.f32 %v1038_v59, %v2799_v58  ;;  %v2116_v58 = vld [vmem:[%s3537_s5 + $0x280] sm:$0xff]  ;;  %v2117_v59 = vld [vmem:[%s3537_s5 + $0x288] sm:$0xff] }
 0x183   : > { %1373 = vmatpush.msra.mxu3 %v2116_v58  ;;  %1288 = vmatpush.msrb.mxu1 %v2086_v8  ;;  %v2135_v58 = vld [vmem:[%s3537_s5 + $0x2e8] sm:$0xff] }
 0x184   : > { %1311 = vmatpush.msrb.mxu2 %v2087_v10  ;;  %v1525_v8 = vld [vmem:[%s3540_s8 + $0x48] sm:$0xff]  ;;  %v1524_v10 = vld [vmem:[%s3540_s8 + $0x40] sm:$0xff] }
 0x185   : > { %1374 = vmatpush.msra.mxu3 %v2114_v62  ;;  %1289 = vmatpush.msrb.mxu1 %v2084_v13  ;;  %v2131_v62 = vld [vmem:[%s3537_s5 + $0x2c8] sm:$0xff] }
 0x186   : > { %1312 = vmatpush.msrb.mxu2 %v2085_v16  ;;  %v1521_v16 = vld [vmem:[%s3540_s8 + $0x28] sm:$0xff] }
 0x187   : > { %1375 = vmatpush.msra.mxu3 %v2112_v2  ;;  %1290 = vmatpush.msrb.mxu1 %v2082_v19  ;;  %v1531_v2 = vld [vmem:[%s3540_s8 + $0x78] sm:$0xff] }
 0x188   : > { %1313 = vmatpush.msrb.mxu2 %v2083_v22  ;;  %v1518_v22 = vld [vmem:[%s3540_s8 + $0x10] sm:$0xff] }
 0x189   : > { %v1041_v7 = vpop.f32.mrf.mxu3  ;;  %1376 = vmatpush.msra.mxu3 %v2110_v6  ;;  %v1527_v6 = vld [vmem:[%s3540_s8 + $0x58] sm:$0xff] }
 0x18a   : > { %v1042_v31 = vadd.f32 %v1041_v7, %v1012_v3  ;;  %v2113_v3 = vld [vmem:[%s3537_s5 + $0x268] sm:$0xff]  ;;  %v2111_v7 = vld [vmem:[%s3537_s5 + $0x258] sm:$0xff] }
 0x18b   : > { %1377 = vmatpush.msra.mxu3 %v2108_v12  ;;  %v1523_v12 = vld [vmem:[%s3540_s8 + $0x38] sm:$0xff] }
 0x18d   : > { %1378 = vmatpush.msra.mxu3 %v2106_v17  ;;  %v1520_v17 = vld [vmem:[%s3540_s8 + $0x20] sm:$0xff] }
 0x18f   : > { %1379 = vmatpush.msra.mxu3 %v2104_v23 }
 0x191   : > { %v1044_v25 = vpop.f32.mrf.mxu3  ;;  %1380 = vmatpush.msra.mxu3 %v2102_v26  ;;  %v1535_v26 = vld [vmem:[%s3540_s8 + $0x98] sm:$0xff] }
 0x192   : > { %v1045_v28 = vadd.f32 %v1044_v25, %v1015_v9  ;;  %v2080_v9 = vld [vmem:[%s3537_s5 + $0x190] sm:$0xff]  ;;  %v2081_v25 = vld [vmem:[%s3537_s5 + $0x198] sm:$0xff] }
 0x193   : > { %1291 = vmatpush.msrb.mxu1 %v2080_v9  ;;  %1314 = vmatpush.msrb.mxu2 %v2081_v25  ;;  %v1517_v9 = vld [vmem:[%s3540_s8 + $0x8] sm:$0xff]  ;;  %v1516_v25 = vld [vmem:[%s3540_s8] sm:$0xff] }
 0x194   : > { %2037 = vmatpush.msk.msrb.mxu0 %vm849_vm4, %v1045_v28  ;;  %v2103_v28 = vld [vmem:[%s3537_s5 + $0x218] sm:$0xff] }
 0x195   : > { %1292 = vmatpush.msrb.mxu1 %v2078_v20  ;;  %1315 = vmatpush.msrb.mxu2 %v2079_v29 }
 0x196   : > { %1070 = vmatpush.msrb.mxu0 %v1042_v31  ;;  %v2077_v31 = vld [vmem:[%s3537_s5 + $0x178] sm:$0xff] }
 0x197   : > { %1293 = vmatpush.msrb.mxu1 %v2076_v30  ;;  %1316 = vmatpush.msrb.mxu2 %v2077_v31  ;;  %v1533_v30 = vld [vmem:[%s3540_s8 + $0x88] sm:$0xff] }
 0x198   : > { %1071 = vmatpush.msrb.mxu0 %v1039_v35 }
 0x199   : > { %1294 = vmatpush.msrb.mxu1 %v2074_v32  ;;  %1317 = vmatpush.msrb.mxu2 %v2075_v33  ;;  %v1532_v32 = vld [vmem:[%s3540_s8 + $0x80] sm:$0xff] }
 0x19a   : > { %1072 = vmatpush.msrb.mxu0 %v1036_v38  ;;  %v2151_v38 = vld [vmem:[%s3537_s5 + $0x368] sm:$0xf] }
 0x19b   : > { %2038 = vmatmul.msk.f32.vlgmr.msrb.gmra.mxu0 %vm1047_vm6, %v953_v11 }
 0x19c   : > { %2071 = vmatpush.msk.msra.mxu0 %vm849_vm4, %v1101_v40  ;;  %v2148_v40 = vld [vmem:[%s3537_s5 + $0x350] sm:$0xff] }
 0x19e   : > { %1226 = vmatpush.msra.mxu0 %v1099_v41  ;;  %v2149_v41 = vld [vmem:[%s3537_s5 + $0x358] sm:$0xff] }
 0x1a0   : > { %1227 = vmatpush.msra.mxu0 %v1097_v43 }
 0x1a2   : > { %1228 = vmatpush.msra.mxu0 %v1095_v44  ;;  %v2146_v44 = vld [vmem:[%s3537_s5 + $0x340] sm:$0xff] }
 0x1a3   : > { %2039 = vmatmul.msk.f32.gmra.mxu0 %vm1047_vm6, %v954_v45  ;;  %v2147_v45 = vld [vmem:[%s3537_s5 + $0x348] sm:$0xff] }
 0x1a4   : > { %1229 = vmatpush.msra.mxu0 %v1093_v46 }
 0x1a6   : > { %1230 = vmatpush.msra.mxu0 %v1091_v21  ;;  %v2144_v21 = vld [vmem:[%s3537_s5 + $0x330] sm:$0xff] }
 0x1a8   : > { %1231 = vmatpush.msra.mxu0 %v1089_v42  ;;  %v2145_v42 = vld [vmem:[%s3537_s5 + $0x338] sm:$0xff] }
 0x1aa   : > { %1232 = vmatpush.msra.mxu0 %v1087_v47  ;;  %v2142_v47 = vld [vmem:[%s3537_s5 + $0x320] sm:$0xff] }
 0x1ac   : > { %1233 = vmatpush.msra.mxu0 %v1085_v48  ;;  %v2143_v48 = vld [vmem:[%s3537_s5 + $0x328] sm:$0xff] }
 0x1ae   : > { %1234 = vmatpush.msra.mxu0 %v1083_v49 }
 0x1b0   : > { %1235 = vmatpush.msra.mxu0 %v1081_v50  ;;  %v2140_v50 = vld [vmem:[%s3537_s5 + $0x310] sm:$0xff] }
 0x1b2   : > { %2127 = vmatpush.msk.msrb.mxu0 %vm849_vm4, %v2123_v51  ;;  %v2141_v51 = vld [vmem:[%s3537_s5 + $0x318] sm:$0xff] }
 0x1b4   : > { %1394 = vmatpush.msrb.mxu0 %v2121_v52 }
 0x1b6   : > { %1395 = vmatpush.msrb.mxu0 %v2119_v55  ;;  %v2139_v55 = vld [vmem:[%s3537_s5 + $0x308] sm:$0xff] }
 0x1b8   : > { %1396 = vmatpush.msrb.mxu0 %v2117_v59  ;;  %v2132_v59 = vld [vmem:[%s3537_s5 + $0x2d0] sm:$0xff] }
 0x1ba   : > { %1397 = vmatpush.msrb.mxu0 %v2115_v63 }
 0x1bc   : > { %1398 = vmatpush.msrb.mxu0 %v2113_v3  ;;  %v1530_v3 = vld [vmem:[%s3540_s8 + $0x70] sm:$0xff] }
 0x1be   : > { %1399 = vmatpush.msrb.mxu0 %v2111_v7  ;;  %v1526_v7 = vld [vmem:[%s3540_s8 + $0x50] sm:$0xff] }
 0x1c0   : > { %1400 = vmatpush.msrb.mxu0 %v2109_v15  ;;  %v1522_v15 = vld [vmem:[%s3540_s8 + $0x30] sm:$0xff] }
 0x1c2   : > { %1401 = vmatpush.msrb.mxu0 %v2107_v18  ;;  %v1519_v18 = vld [vmem:[%s3540_s8 + $0x18] sm:$0xff] }
 0x1c4   : > { %1402 = vmatpush.msrb.mxu0 %v2105_v24 }
 0x1c6   : > { %1403 = vmatpush.msrb.mxu0 %v2103_v28  ;;  %v1534_v28 = vld [vmem:[%s3540_s8 + $0x90] sm:$0xff] }
 0x218   : > { %v3085_v34 = vpop.f32.mrf.mxu0 }
 0x219   : > { %2069 = vmatmul.msk.f32.vlgmr.msrb.gmra.mxu3 %vm1130_vm7, %v3085_v34  ;;  %2072 = vmatmul.msk.f32.vlgmr.msra.gmra.mxu0 %vm1130_vm7, %v3085_v34  ;;  %v1127_v14 = vrot.slane %v3085_v34, 1  ;;  %v1352_v43 = vrot.slane %v3085_v34, 3  ;;  %v1266_v52 = vrot.slane %v3085_v34, 2  ;;  %v1438_v0 = vrot.slane %v3085_v34, 4 }
 0x21a   : > { %1542 = vmatpush.msrb.mxu3 %v1531_v2  ;;  %1577 = vmatpush.msra.mxu0 %v1535_v26  ;;  %v1619_v26 = vld [vmem:[%s3541_s9 + $0x18] sm:$0xff] }
 0x21c   : > { %1543 = vmatpush.msrb.mxu3 %v1530_v3  ;;  %1578 = vmatpush.msra.mxu0 %v1534_v28  ;;  %v2163_v28 = vld [vmem:[%s3541_s9 + $0x58] sm:$0xff] }
 0x21e   : > { %1544 = vmatpush.msrb.mxu3 %v1529_v4  ;;  %1579 = vmatpush.msra.mxu0 %v1533_v30 }
 0x220   : > { %v3091_v35 = vpop.f32.mrf.mxu0  ;;  %1545 = vmatpush.msrb.mxu3 %v1528_v5  ;;  %1580 = vmatpush.msra.mxu0 %v1532_v32  ;;  %v2171_v5 = vld [vmem:[%s3541_s9 + $0x98] sm:$0xff]  ;;  %v2204_v32 = vld [vmem:[%s3541_s9 + $0x180] sm:$0xff] }
 0x221   : > { %2070 = vmatmul.msk.f32.gmra.mxu3 %vm1130_vm7, %v3091_v35  ;;  %2073 = vmatmul.msk.f32.gmra.mxu0 %vm1130_vm7, %v3091_v35  ;;  %v1128_v36 = vrot.slane %v3091_v35, 1  ;;  %v1353_v39 = vrot.slane %v3091_v35, 3  ;;  %v1267_v49 = vrot.slane %v3091_v35, 2  ;;  %v1439_v63 = vrot.slane %v3091_v35, 4 }
 0x222   : > { %1546 = vmatpush.msrb.mxu3 %v1527_v6  ;;  %v2170_v6 = vld [vmem:[%s3541_s9 + $0x90] sm:$0xff] }
 0x223   : > { %v1129_v11 = vsel %vm517_vm1, %v1127_v14, %v1128_v36  ;;  %v1354_v46 = vsel %vm758_vm3, %v1352_v43, %v1353_v39  ;;  %v1268_v56 = vsel %vm667_vm2, %v1266_v52, %v1267_v49  ;;  %v1440_v1 = vsel %vm849_vm4, %v1438_v0, %v1439_v63 }
 0x224   : > { %2063 = vmatmul.msk.f32.vlgmr.msra.gmra.mxu1 %vm1130_vm7, %v1129_v11  ;;  %2066 = vmatmul.msk.f32.vlgmr.msra.gmra.mxu2 %vm1130_vm7, %v1129_v11  ;;  %v1501_v11 = vld [vmem:[%s3538_s6] sm:$0x3] }
 0x225   : > { %2152 = vmatpush.msk.msra.mxu1 %vm849_vm4, %v2150_v37  ;;  %2155 = vmatpush.msk.msra.mxu2 %vm849_vm4, %v2151_v38  ;;  %v1503_v43 = vperm.slane %v1501_v11, 0 }
 0x226   : > { %1547 = vmatpush.msrb.mxu3 %v1526_v7  ;;  %v2169_v7 = vld [vmem:[%s3541_s9 + $0x88] sm:$0xff] }
 0x227   : > { %1457 = vmatpush.msra.mxu1 %v2148_v40  ;;  %1480 = vmatpush.msra.mxu2 %v2149_v41 }
 0x228   : > { %1548 = vmatpush.msrb.mxu3 %v1525_v8  ;;  %v1625_v8 = vld [vmem:[%s3541_s9 + $0x48] sm:$0xff] }
 0x229   : > { %2125 = vmatmul.msk.f32.vlgmr.msra.gmra.mxu3 %vm1130_vm7, %v1354_v46  ;;  %2128 = vmatmul.msk.f32.vlgmr.msrb.gmra.mxu0 %vm1130_vm7, %v1354_v46 }
 0x22a   : > { %1458 = vmatpush.msra.mxu1 %v2146_v44  ;;  %1481 = vmatpush.msra.mxu2 %v2147_v45 }
 0x22b   : > { %1549 = vmatpush.msrb.mxu3 %v1524_v10  ;;  %v1624_v10 = vld [vmem:[%s3541_s9 + $0x40] sm:$0xff] }
 0x22c   : > { %2064 = vmatmul.msk.f32.gmra.mxu1 %vm1130_vm7, %v1128_v36  ;;  %2067 = vmatmul.msk.f32.gmra.mxu2 %vm1130_vm7, %v1128_v36 }
 0x22d   : > { %1459 = vmatpush.msra.mxu1 %v2144_v21  ;;  %1482 = vmatpush.msra.mxu2 %v2145_v42 }
 0x22e   : > { %1550 = vmatpush.msrb.mxu3 %v1523_v12  ;;  %v2168_v12 = vld [vmem:[%s3541_s9 + $0x80] sm:$0xff] }
 0x22f   : > { %1460 = vmatpush.msra.mxu1 %v2142_v47  ;;  %1483 = vmatpush.msra.mxu2 %v2143_v48 }
 0x230   : > { %1551 = vmatpush.msrb.mxu3 %v1522_v15  ;;  %v1623_v15 = vld [vmem:[%s3541_s9 + $0x38] sm:$0xff] }
 0x231   : > { %2126 = vmatmul.msk.f32.gmra.mxu3 %vm1130_vm7, %v1353_v39  ;;  %2129 = vmatmul.msk.f32.gmra.mxu0 %vm1130_vm7, %v1353_v39 }
 0x232   : > { %1461 = vmatpush.msra.mxu1 %v2140_v50  ;;  %1484 = vmatpush.msra.mxu2 %v2141_v51  ;;  %v1504_v50 = vperm.slane %v1501_v11, 1  ;;  %v2194_v11 = vld [vmem:[%s3541_s9 + $0x138] sm:$0xff] }
 0x233   : > { %1552 = vmatpush.msrb.mxu3 %v1521_v16  ;;  %v2167_v16 = vld [vmem:[%s3541_s9 + $0x78] sm:$0xff] }
 0x234   : > { %2097 = vmatmul.msk.f32.vlgmr.msrb.gmra.mxu1 %vm1130_vm7, %v1268_v56  ;;  %2100 = vmatmul.msk.f32.vlgmr.msrb.gmra.mxu2 %vm1130_vm7, %v1268_v56 }
 0x235   : > { %1462 = vmatpush.msra.mxu1 %v2138_v54  ;;  %1485 = vmatpush.msra.mxu2 %v2139_v55 }
 0x236   : > { %1553 = vmatpush.msrb.mxu3 %v1520_v17  ;;  %v1622_v17 = vld [vmem:[%s3541_s9 + $0x30] sm:$0xff] }
 0x237   : > { %1463 = vmatpush.msra.mxu1 %v2136_v57  ;;  %1486 = vmatpush.msra.mxu2 %v2137_v27 }
 0x238   : > { %1554 = vmatpush.msrb.mxu3 %v1519_v18  ;;  %v2182_v18 = vld [vmem:[%s3541_s9 + $0xe0] sm:$0xff] }
 0x239   : > { %1464 = vmatpush.msra.mxu1 %v2134_v53  ;;  %1487 = vmatpush.msra.mxu2 %v2135_v58 }
 0x23a   : > { %1555 = vmatpush.msrb.mxu3 %v1518_v22  ;;  %v2166_v22 = vld [vmem:[%s3541_s9 + $0x70] sm:$0xff] }
 0x23b   : > { %1465 = vmatpush.msra.mxu1 %v2132_v59  ;;  %1488 = vmatpush.msra.mxu2 %v2133_v60 }
 0x23c   : > { %2098 = vmatmul.msk.f32.gmra.mxu1 %vm1130_vm7, %v1267_v49  ;;  %2101 = vmatmul.msk.f32.gmra.mxu2 %vm1130_vm7, %v1267_v49 }
 0x23d   : > { %1466 = vmatpush.msra.mxu1 %v2130_v61  ;;  %1489 = vmatpush.msra.mxu2 %v2131_v62 }
 0x23e   : > { %1556 = vmatpush.msrb.mxu3 %v1517_v9  ;;  %v1620_v9 = vld [vmem:[%s3541_s9 + $0x20] sm:$0xff] }
 0x23f   : > { %1648 = vmatpush.msrb.mxu2 %v2171_v5 }
 0x240   : > { %1557 = vmatpush.msrb.mxu3 %v1516_v25  ;;  %v2164_v25 = vld [vmem:[%s3541_s9 + $0x60] sm:$0xff] }
 0x241   : > { %1649 = vmatpush.msrb.mxu2 %v2170_v6 }
 0x242   : > { %1670 = vmatpush.msra.mxu3 %v1625_v8  ;;  %v1801_v8 = vld [vmem:[%s3543_s11 + $0x48] sm:$0xff] }
 0x243   : > { %1650 = vmatpush.msrb.mxu2 %v2169_v7 }
 0x244   : > { %2153 = vmatmul.msk.f32.vlgmr.msra.gmra.mxu1 %vm1130_vm7, %v1440_v1  ;;  %2156 = vmatmul.msk.f32.vlgmr.msra.gmra.mxu2 %vm1130_vm7, %v1440_v1 }
 0x245   : > { %1671 = vmatpush.msra.mxu3 %v1624_v10  ;;  %1651 = vmatpush.msrb.mxu2 %v2168_v12  ;;  %v1800_v10 = vld [vmem:[%s3543_s11 + $0x40] sm:$0xff]  ;;  %v1799_v12 = vld [vmem:[%s3543_s11 + $0x38] sm:$0xff] }
 0x247   : > { %1672 = vmatpush.msra.mxu3 %v1623_v15  ;;  %1652 = vmatpush.msrb.mxu2 %v2167_v16  ;;  %v1798_v15 = vld [vmem:[%s3543_s11 + $0x30] sm:$0xff]  ;;  %v1796_v16 = vld [vmem:[%s3543_s11 + $0x20] sm:$0xff] }
 0x249   : > { %1673 = vmatpush.msra.mxu3 %v1622_v17  ;;  %1653 = vmatpush.msrb.mxu2 %v2166_v22  ;;  %v1795_v17 = vld [vmem:[%s3543_s11 + $0x18] sm:$0xff]  ;;  %v1792_v22 = vld [vmem:[%s3543_s11] sm:$0xff] }
 0x24c   : > { %2154 = vmatmul.msk.f32.gmra.mxu1 %vm1130_vm7, %v1439_v63  ;;  %2157 = vmatmul.msk.f32.gmra.mxu2 %vm1130_vm7, %v1439_v63 }
 0x296   : > { %v1237_v20 = vpop.f32.mrf.mxu0 }
 0x29c   : > { %v1214_v23 = vpop.f32.mrf.mxu3 }
 0x29e   : > { %v1240_v35 = vpop.f32.mrf.mxu0 }
 0x2a1   : > { %v1158_v13 = vpop.f32.mrf.mxu1 }
 0x2a2   : > { %v1215_v36 = vadd.f32 %v1214_v23, %v1158_v13  ;;  %v2183_v13 = vld [vmem:[%s3541_s9 + $0xe8] sm:$0xff] }
 0x2a3   : > { %1704 = vmatpush.msrb.mxu0 %v2183_v13  ;;  %v1621_v23 = vld [vmem:[%s3541_s9 + $0x28] sm:$0xff] }
 0x2a4   : > { %v1217_v33 = vpop.f32.mrf.mxu3  ;;  %1674 = vmatpush.msra.mxu3 %v1621_v23  ;;  %v1797_v13 = vld [vmem:[%s3543_s11 + $0x28] sm:$0xff]  ;;  %v1843_v23 = vld [vmem:[%s3545_s13 + $0x50] sm:$0xf] }
 0x2a5   : > { %1705 = vmatpush.msrb.mxu0 %v2182_v18  ;;  %v1794_v18 = vld [vmem:[%s3543_s11 + $0x10] sm:$0xff] }
 0x2a6   : > { %v1405_v42 = vpop.f32.mrf.mxu0  ;;  %1675 = vmatpush.msra.mxu3 %v1620_v9  ;;  %v1841_v9 = vld [vmem:[%s3545_s13 + $0x40] sm:$0xff] }
 0x2a7   : > { %v1181_v19 = vpop.f32.mrf.mxu2 }
 0x2a8   : > { %v1238_v40 = vadd.f32 %v1237_v20, %v1181_v19  ;;  %v2181_v19 = vld [vmem:[%s3541_s9 + $0xd8] sm:$0xff]  ;;  %1676 = vmatpush.msra.mxu3 %v1619_v26  ;;  %v2162_v20 = vld [vmem:[%s3541_s9 + $0x50] sm:$0xff] }
 0x2a9   : > { %v1161_v24 = vpop.f32.mrf.mxu1  ;;  %1706 = vmatpush.msrb.mxu0 %v2181_v19  ;;  %v1793_v19 = vld [vmem:[%s3543_s11 + $0x8] sm:$0xff]  ;;  %v1839_v26 = vld [vmem:[%s3545_s13 + $0x30] sm:$0xff] }
 0x2aa   : > { %v1218_v45 = vadd.f32 %v1217_v33, %v1161_v24  ;;  %v2165_v24 = vld [vmem:[%s3541_s9 + $0x68] sm:$0xff]  ;;  %v2203_v33 = vld [vmem:[%s3541_s9 + $0x178] sm:$0xff] }
 0x2ab   : > { %1654 = vmatpush.msrb.mxu2 %v2165_v24  ;;  %v1842_v24 = vld [vmem:[%s3545_s13 + $0x48] sm:$0xff] }
 0x2ac   : > { %v1382_v38 = vpop.f32.mrf.mxu3 }
 0x2ad   : > { %1655 = vmatpush.msrb.mxu2 %v2164_v25  ;;  %v1840_v25 = vld [vmem:[%s3545_s13 + $0x38] sm:$0xff] }
 0x2ae   : > { %v1408_v61 = vpop.f32.mrf.mxu0 }
 0x2af   : > { %v1184_v29 = vpop.f32.mrf.mxu2  ;;  %1656 = vmatpush.msrb.mxu2 %v2163_v28  ;;  %v1838_v28 = vld [vmem:[%s3545_s13 + $0x28] sm:$0xff] }
 0x2b0   : > { %v1241_v54 = vadd.f32 %v1240_v35, %v1184_v29  ;;  %v2205_v29 = vld [vmem:[%s3541_s9 + $0x188] sm:$0xff] }
 0x2b1   : > { %v1296_v31 = vpop.f32.mrf.mxu1  ;;  %1657 = vmatpush.msrb.mxu2 %v2162_v20 }
 0x2b2   : > { %v1325_v37 = vadd.f32 %v1296_v31, %v1215_v36 }
 0x2b3   : > { %1774 = vmatpush.msra.mxu2 %v2205_v29 }
 0x2b4   : > { %v1411_v41 = vadd.f32 %v1382_v38, %v1325_v37  ;;  %v1385_v51 = vpop.f32.mrf.mxu3  ;;  %v1515_v38 = vld [vmem:[%s3539_s7] sm:$0x1f] }
 0x2b5   : > { %1775 = vmatpush.msra.mxu2 %v2204_v32 }
 0x2b7   : > { %v1319_v34 = vpop.f32.mrf.mxu2  ;;  %1776 = vmatpush.msra.mxu2 %v2203_v33 }
 0x2b8   : > { %v1326_v46 = vadd.f32 %v1319_v34, %v1238_v40  ;;  %v2202_v34 = vld [vmem:[%s3541_s9 + $0x170] sm:$0xff]  ;;  %v2192_v40 = vld [vmem:[%s3541_s9 + $0x128] sm:$0xff] }
 0x2b9   : > { %v1299_v14 = vpop.f32.mrf.mxu1  ;;  %1777 = vmatpush.msra.mxu2 %v2202_v34 }
 0x2ba   : > { %v1327_v47 = vadd.f32 %v1299_v14, %v1218_v45  ;;  %v1412_v49 = vadd.f32 %v1405_v42, %v1326_v46  ;;  %v2190_v45 = vld [vmem:[%s3541_s9 + $0x118] sm:$0xff]  ;;  %v2178_v46 = vld [vmem:[%s3541_s9 + $0xc0] sm:$0xff]  ;;  %v1618_v42 = vld [vmem:[%s3541_s9 + $0x10] sm:$0xff] }
 0x2bb   : > { %1677 = vmatpush.msra.mxu3 %v1618_v42  ;;  %v1844_v42 = vld [vmem:[%s3546_s14] sm:$0x1] }
 0x2bc   : > { %v1413_v56 = vadd.f32 %v1385_v51, %v1327_v47  ;;  %v2177_v47 = vld [vmem:[%s3541_s9 + $0xb8] sm:$0xff]  ;;  %v2187_v51 = vld [vmem:[%s3541_s9 + $0x100] sm:$0xff] }
 0x2bf   : > { %v1322_v39 = vpop.f32.mrf.mxu2 }
 0x2c0   : > { %v1328_v27 = vadd.f32 %v1322_v39, %v1241_v54  ;;  %v2193_v39 = vld [vmem:[%s3541_s9 + $0x130] sm:$0xff]  ;;  %v1616_v54 = vld [vmem:[%s3541_s9] sm:$0xff] }
 0x2c1   : > { %v1468_v44 = vpop.f32.mrf.mxu1 }
 0x2c2   : > { %v1497_v21 = vadd.f32 %v1468_v44, %v1411_v41  ;;  %v1414_v62 = vadd.f32 %v1408_v61, %v1328_v27  ;;  %v2180_v41 = vld [vmem:[%s3541_s9 + $0xd0] sm:$0xff]  ;;  %v2179_v44 = vld [vmem:[%s3541_s9 + $0xc8] sm:$0xff]  ;;  %v2174_v27 = vld [vmem:[%s3541_s9 + $0xa0] sm:$0xff] }
 0x2c3   : > { %1707 = vmatpush.msrb.mxu0 %v2180_v41  ;;  %v2196_v61 = vld [vmem:[%s3541_s9 + $0x140] sm:$0xff]  ;;  %v1834_v41 = vld [vmem:[%s3545_s13 + $0x8] sm:$0xff] }
 0x2c4   : > { %v1507_v48 = vadd.f32 %v1503_v43, %v1497_v21  ;;  %v2189_v21 = vld [vmem:[%s3541_s9 + $0x110] sm:$0xff] }
 0x2c5   : > { %1708 = vmatpush.msrb.mxu0 %v2179_v44  ;;  %v1807_v44 = vld [vmem:[%s3544_s12] sm:$0x1] }
 0x2c6   : > { %2276 = vtanh.f32 %v1507_v48  ;;  %v2188_v48 = vld [vmem:[%s3541_s9 + $0x108] sm:$0xff] }
 0x2c7   : > { %v1491_v52 = vpop.f32.mrf.mxu2  ;;  %1709 = vmatpush.msrb.mxu0 %v2178_v46 }
 0x2c8   : > { %v1498_v55 = vadd.f32 %v1491_v52, %v1412_v49  ;;  %v1617_v49 = vld [vmem:[%s3541_s9 + $0x8] sm:$0xff] }
 0x2c9   : > { %v1471_v57 = vpop.f32.mrf.mxu1  ;;  %1710 = vmatpush.msrb.mxu0 %v2177_v47  ;;  %1678 = vmatpush.msra.mxu3 %v1617_v49  ;;  %v2201_v52 = vld [vmem:[%s3541_s9 + $0x168] sm:$0xff] }
 0x2ca   : > { %v1508_v53 = vadd.f32 %v1504_v50, %v1498_v55  ;;  %v1499_v58 = vadd.f32 %v1471_v57, %v1413_v56  ;;  %v2175_v55 = vld [vmem:[%s3541_s9 + $0xa8] sm:$0xff]  ;;  %1778 = vmatpush.msra.mxu2 %v2201_v52  ;;  %v2186_v56 = vld [vmem:[%s3541_s9 + $0xf8] sm:$0xff]  ;;  %v2200_v57 = vld [vmem:[%s3541_s9 + $0x160] sm:$0xff] }
 0x2cb   : > { %1679 = vmatpush.msra.mxu3 %v1616_v54 }
 0x2cc   : > { %v2277_v59 = vpop.eup %2276  ;;  %2278 = vtanh.f32 %v1508_v53  ;;  %v1509_v60 = vadd.f32 %v1503_v43, %v1499_v58  ;;  %v2191_v43 = vld [vmem:[%s3541_s9 + $0x120] sm:$0xff]  ;;  %v2185_v53 = vld [vmem:[%s3541_s9 + $0xf0] sm:$0xff]  ;;  %1779 = vmatpush.msra.mxu2 %v2200_v57  ;;  %v2199_v58 = vld [vmem:[%s3541_s9 + $0x158] sm:$0xff] }
 0x2cd   : > { %1558 = vmatmul.f32.vlgmr.msrb.gmra.mxu3 %v2277_v59  ;;  %v2198_v59 = vld [vmem:[%s3541_s9 + $0x150] sm:$0xff] }
 0x2ce   : > { %2280 = vtanh.f32 %v1509_v60  ;;  %1780 = vmatpush.msra.mxu2 %v2199_v58  ;;  %v2197_v60 = vld [vmem:[%s3541_s9 + $0x148] sm:$0xff] }
 0x2cf   : > { %v1494_v63 = vpop.f32.mrf.mxu2 }
 0x2d0   : > { %v1500_v0 = vadd.f32 %v1494_v63, %v1414_v62  ;;  %1781 = vmatpush.msra.mxu2 %v2198_v59  ;;  %v1806_v62 = vld [vmem:[%s3543_s11 + $0x70] sm:$0xff]  ;;  %v1805_v63 = vld [vmem:[%s3543_s11 + $0x68] sm:$0xff] }
 0x2d1   : > { %1813 = vmatpush.msrb.mxu3 %v1806_v62 }
 0x2d2   : > { %v2279_v1 = vpop.eup %2278  ;;  %v1510_v2 = vadd.f32 %v1504_v50, %v1500_v0  ;;  %v2176_v50 = vld [vmem:[%s3541_s9 + $0xb0] sm:$0xff]  ;;  %1782 = vmatpush.msra.mxu2 %v2197_v60  ;;  %v1804_v0 = vld [vmem:[%s3543_s11 + $0x60] sm:$0xff] }
 0x2d3   : > { %2158 = vmatmul.msk.f32.vlgmr.msra.gmra.mxu0 %vm525_vm0, %v2279_v1  ;;  %1814 = vmatpush.msrb.mxu3 %v1805_v63  ;;  %v1803_v1 = vld [vmem:[%s3543_s11 + $0x58] sm:$0xff] }
 0x2d4   : > { %v2281_v3 = vpop.eup %2280  ;;  %2282 = vtanh.f32 %v1510_v2  ;;  %1711 = vmatpush.msrb.mxu0 %v2176_v50  ;;  %1783 = vmatpush.msra.mxu2 %v2196_v61  ;;  %v1802_v2 = vld [vmem:[%s3543_s11 + $0x50] sm:$0xff] }
 0x2d5   : > { %1561 = vmatmul.f32.gmra.mxu3 %v2281_v3 }
 0x2d6   : > { %1712 = vmatpush.msrb.mxu0 %v2175_v55  ;;  %1815 = vmatpush.msrb.mxu3 %v1804_v0 }
 0x2d8   : > { %1713 = vmatpush.msrb.mxu0 %v2174_v27  ;;  %1816 = vmatpush.msrb.mxu3 %v1803_v1 }
 0x2da   : > { %v2283_v4 = vpop.eup %2282  ;;  %1817 = vmatpush.msrb.mxu3 %v1802_v2  ;;  %2208 = vmatpush.msk.msra.mxu0 %vm849_vm4, %v1843_v23 }
 0x2db   : > { %2159 = vmatmul.msk.f32.gmra.mxu0 %vm525_vm0, %v2283_v4 }
 0x2dc   : > { %1818 = vmatpush.msrb.mxu3 %v1801_v8  ;;  %1857 = vmatpush.msra.mxu0 %v1842_v24 }
 0x2de   : > { %1819 = vmatpush.msrb.mxu3 %v1800_v10  ;;  %1858 = vmatpush.msra.mxu0 %v1841_v9 }
 0x2e0   : > { %1820 = vmatpush.msrb.mxu3 %v1799_v12  ;;  %1859 = vmatpush.msra.mxu0 %v1840_v25 }
 0x2e2   : > { %1821 = vmatpush.msrb.mxu3 %v1798_v15  ;;  %1860 = vmatpush.msra.mxu0 %v1839_v26 }
 0x2e4   : > { %1822 = vmatpush.msrb.mxu3 %v1797_v13  ;;  %1861 = vmatpush.msra.mxu0 %v1838_v28 }
 0x2e6   : > { %1823 = vmatpush.msrb.mxu3 %v1796_v16 }
 0x2e8   : > { %1824 = vmatpush.msrb.mxu3 %v1795_v17 }
 0x2ea   : > { %1825 = vmatpush.msrb.mxu3 %v1794_v18 }
 0x2ec   : > { %1826 = vmatpush.msrb.mxu3 %v1793_v19 }
 0x2ee   : > { %1827 = vmatpush.msrb.mxu3 %v1792_v22 }
 0x350   : > { %v1559_v30 = vpop.f32.mrf.mxu3  ;;  %v1582_v31 = vpop.f32.mrf.mxu0 }
 0x351   : > { %v1583_v37 = vadd.f32 %v1582_v31, %v1559_v30 }
 0x358   : > { %v1562_v35 = vpop.f32.mrf.mxu3  ;;  %v1585_v14 = vpop.f32.mrf.mxu0 }
 0x359   : > { %v1586_v36 = vadd.f32 %v1585_v14, %v1562_v35  ;;  %v1789_v14 = vld [vmem:[%s3542_s10] sm:$0x1] }
 0x35b   : > { %2160 = vmatpush.msk.msrb.mxu1 %vm1592_vm8, %v1586_v36 }
 0x35d   : > { %1611 = vmatpush.msrb.mxu1 %v1583_v37 }
 0x35e   : > { %2161 = vmatmul.msk.f32.vlgmr.msrb.gmra.mxu1 %vm1588_vm9, %v1515_v38 }
 0x35f   : > { %1739 = vmatpush.msra.mxu1 %v2194_v11  ;;  %v1837_v11 = vld [vmem:[%s3545_s13 + $0x20] sm:$0xff] }
 0x360   : > { %1862 = vmatpush.msra.mxu0 %v1837_v11 }
 0x361   : > { %1740 = vmatpush.msra.mxu1 %v2193_v39  ;;  %v1836_v39 = vld [vmem:[%s3545_s13 + $0x18] sm:$0xff] }
 0x362   : > { %1863 = vmatpush.msra.mxu0 %v1836_v39 }
 0x363   : > { %1741 = vmatpush.msra.mxu1 %v2192_v40  ;;  %v1835_v40 = vld [vmem:[%s3545_s13 + $0x10] sm:$0xff] }
 0x364   : > { %1864 = vmatpush.msra.mxu0 %v1835_v40 }
 0x365   : > { %1742 = vmatpush.msra.mxu1 %v2191_v43  ;;  %v1833_v43 = vld [vmem:[%s3545_s13] sm:$0xff] }
 0x366   : > { %1865 = vmatpush.msra.mxu0 %v1834_v41 }
 0x367   : > { %1743 = vmatpush.msra.mxu1 %v2190_v45 }
 0x368   : > { %1866 = vmatpush.msra.mxu0 %v1833_v43 }
 0x369   : > { %1744 = vmatpush.msra.mxu1 %v2189_v21 }
 0x36b   : > { %1745 = vmatpush.msra.mxu1 %v2188_v48 }
 0x36d   : > { %1746 = vmatpush.msra.mxu1 %v2187_v51 }
 0x36f   : > { %1747 = vmatpush.msra.mxu1 %v2186_v56 }
 0x371   : > { %1748 = vmatpush.msra.mxu1 %v2185_v53 }
 0x3db   : > { %v1613_v3 = vpop.f32.mrf.mxu1 }
 0x3dc   : > { %v1638_v4 = vrot.slane %v1613_v3, 1  ;;  %v1695_v5 = vrot.slane %v1613_v3, 2  ;;  %v1730_v6 = vrot.slane %v1613_v3, 3  ;;  %2173 = vmatmul.msk.f32.vlgmr.msra.gmra.mxu3 %vm1639_vm10, %v1613_v3  ;;  %v1765_v7 = vrot.slane %v1613_v3, 4 }
 0x3de   : > { %2172 = vmatmul.msk.f32.vlgmr.msrb.gmra.mxu2 %vm1639_vm10, %v1638_v4  ;;  %2184 = vmatmul.msk.f32.vlgmr.msrb.gmra.mxu0 %vm1639_vm10, %v1695_v5 }
 0x3df   : > { %2195 = vmatmul.msk.f32.vlgmr.msra.gmra.mxu1 %vm1639_vm10, %v1730_v6 }
 0x3e6   : > { %2206 = vmatmul.msk.f32.vlgmr.msra.gmra.mxu2 %vm1639_vm10, %v1765_v7 }
 0x45b   : > { %v1715_v31 = vpop.f32.mrf.mxu0 }
 0x45c   : > { %v1750_v33 = vpop.f32.mrf.mxu1 }
 0x45f   : > { %v1681_v29 = vpop.f32.mrf.mxu3 }
 0x461   : > { %v1659_v20 = vpop.f32.mrf.mxu2 }
 0x462   : > { %v1682_v30 = vadd.f32 %v1681_v29, %v1659_v20 }
 0x464   : > { %v1718_v32 = vadd.f32 %v1715_v31, %v1682_v30 }
 0x466   : > { %v1753_v34 = vadd.f32 %v1750_v33, %v1718_v32 }
 0x469   : > { %v1785_v35 = vpop.f32.mrf.mxu2 }
 0x46a   : > { %v1788_v36 = vadd.f32 %v1785_v35, %v1753_v34 }
 0x46c   : > { %v1790_v37 = vadd.f32 %v1789_v14, %v1788_v36 }
 0x46e   : > { %2284 = vtanh.f32 %v1790_v37 }
 0x474   : > { %v2285_v38 = vpop.eup %2284 }
 0x475   : > { %2207 = vmatmul.msk.f32.vlgmr.msrb.gmra.mxu3 %vm1808_vm11, %v2285_v38 }
 0x4f8   : > { %v1829_v45 = vpop.f32.mrf.mxu3 }
 0x4f9   : > { %v1830_v46 = vadd.f32 %v1829_v45, %v1807_v44 }
 0x4fb   : > { %2286 = vtanh.f32 %v1830_v46 }
 0x501   : > { %v2287_v21 = vpop.eup %2286 }
 0x502   : > { %2209 = vmatmul.msk.f32.vlgmr.msra.gmra.mxu0 %vm1130_vm7, %v2287_v21 }
 0x57f   : > { %v1868_v47 = vpop.f32.mrf.mxu0 }
 0x580   : > { %v1869_v48 = vadd.f32 %v1868_v47, %v1844_v42 }
 0x582   : > { %v1872_v49 = vsel %vm1871_vm12, %v1869_v48, -inf }
 0x583   : > { %1873 = vmax.xlane.f32.xlu0 %v1872_v49 }
 0x5f6   : > { %v1874_v50 = vpop.xlane.xlu0 %1873 }
 0x5f7   : > { %v1875_v51 = vsub.f32 %v1869_v48, %v1874_v50 }
 0x5f9   : > { %v1876_v52 = vmul.f32 1.442695, %v1875_v51 }
 0x5fb   : > { %2288 = vpow2.f32 %v1876_v52 }
 0x601   : > { %v2289_v54 = vpop.eup %2288 }
 0x602   : > { %v1878_v55 = vsel %vm1871_vm12, %v2289_v54, 0.0 }
 0x603   : > { %1879 = vadd.xlane.f32.xlu0 %v1878_v55 }
 0x676   : > { %v1880_v56 = vpop.xlane.xlu0 %1879 }
 0x677   : > { %2290 = vrcp.f32 %v1880_v56 }
 0x67d   : > { %v2291_v57 = vpop.eup %2290 }
 0x67e   : > { %v1882_v27 = vmul.f32 %v2291_v57, %v1880_v56 }
 0x680   : > { %v1883_v53 = vsub.f32 2.0, %v1882_v27 }
 0x682   : > { %v1884_v58 = vmul.f32 %v2291_v57, %v1883_v53 }
 0x684   : > { %v1885_v59 = vmul.f32 %v2289_v54, %v1884_v58 }
 0x686   : > { %1886 = vst [vmem:[%s486_s29] sm:$0x1] %v1885_v59 }
 0x687   : > { %2319 = shalt.err (!%p2316_p3)
}
 0x688   : > { %2221 = dma.vmem_to_hbm [thread:$0]  (%p2474_p5), %s1899_s20, 16, %s1901_s27, %s1888_s24  }
 0x689 PF: > { %s3568_s16 = sld [smem:[#allocation7_spill]] }
 0x68a   : > { %s3569_s25 = sld [smem:[#allocation5_spill]] }
 0x68f   : > { %p2227_p4 = scmp.ge.s32.totalorder %s3568_s16, 2 }
 0x690   : > { %s1912_s0 = sand.u32 1, %s3569_s25  }
 0x691   : > { %p2224_p7 = pnand %p2227_p4, %p2478_p6  ;;  %s1913_s26 = scalar_lea.sflag [#allocation3], %s1912_s0 }
 0x693   : > { %p2225_p8 = pneg %p2224_p7 }
 0x695   : > { %2337 = dma.done.wait (%p2225_p8), %s1913_s26, 16  }
 0x696   : > { %2339 = vsyncadd (%p2225_p8), %s1913_s26, 4294967280  ;;  %s3571_s21 = sld [smem:[#allocation8_spill]]  ;;  %s3574_s18 = smov %s2346_s19 }
 0x697   : > { %s3572_s28 = sld [smem:[#allocation6_spill]] }
 0x698   : > { %s3573_s20 = sld [smem:[#allocation9_spill]] }
 0x69c   : > { %p25_p9 = scmp.ge.s32.totalorder %s3571_s21, 4  }
 0x69d   : > { %s3575_s19 = smov %s3572_s28 }
 0x69e   :  { %27 = sbr.rel (!%p25_p9) target bundleno = 5 (0x5), region = 127 }
 0x6a3   :  { %1918 = vsyncpa [#allocation3], 1 }
 0x6a4   :  { %1920 = vsyncpa [#allocation3 + $0x1], 1 }

</bundles_post_ra>
